<compile_context>
chip_gen: v7x
topology: tpu7x:2x2x1
jax: 0.10.0
libtpu: 0.0.40
codegen_flags: <defaults>
</compile_context>

<pallas_src>
import jax
import jax.numpy as jnp
from jax.experimental import pallas as pl
from jax.experimental.pallas import tpu as pltpu


def rv_predictor_kernel(
    x_ref,       # [S*Bp, Din]  time-major, batch padded to a multiple of 8
    w1_ref,      # [Din, H]     ffn1.linear1 weight (transposed)
    wslab_ref,   # [H, 6H+1]    [ w2 | wih0 | w3 | w4 ]  (gate blocks i|f|o|g)
    wblk_ref,    # [2H, 8H]     [[whh0, wih1],[0, whh1]] (gate blocks i|f|o|g)
    bias_ref,    # [6, 8H]      rows: b1, b2, bg0, bg1, b3, b4 (zero padded)
    out_ref,     # [Bp, 1]
):
    B = out_ref.shape[0]
    SB, _ = x_ref.shape
    S = SB // B
    H = w1_ref.shape[1]
    H2, H3, H4 = 2 * H, 3 * H, 4 * H
    f32 = jnp.float32

    # ---- unpack slabs (static slices of loaded values; one-time cost) ----
    wslab = wslab_ref[...]
    w2 = wslab[:, :H]
    wih0 = wslab[:, H:5 * H]
    w3 = wslab[:, 5 * H:6 * H]
    w4 = wslab[:, 6 * H:6 * H + 1]

    bias = bias_ref[...]
    b1 = bias[0:1, :H]
    b2 = bias[1:2, :H]
    bg0 = bias[2:3, :H4]
    bg1 = bias[3:4, :H4]
    b3 = bias[4:5, :H]
    b4 = bias[5:6, :1]

    # ---- hoisted FFN1 over the whole sequence (dropout identity in eval) ----
    a = jnp.maximum(
        jnp.dot(x_ref[...], w1_ref[...], preferred_element_type=f32) + b1, 0.0)
    z = jnp.dot(a, w2, preferred_element_type=f32) + b2            # [S*B, H]

    # ---- hoisted LSTM layer-0 input projection for all timesteps ----
    xp0 = jnp.dot(z, wih0, preferred_element_type=f32) + bg0       # [S*B, 4H]

    wblk = wblk_ref[...]                                           # [2H, 8H]
    bg1b = jnp.broadcast_to(bg1, (B, H4))                          # hoisted

    def gate_act(gates):
        # gates packed [i | f | o | g]: one sigmoid over 3H lanes, one tanh.
        sfo = jax.nn.sigmoid(gates[:, :H3])
        g = jnp.tanh(gates[:, H3:])
        return sfo[:, :H], sfo[:, H:H2], sfo[:, H2:H3], g

    # ---- peeled t = 0 (all initial states are zero) ----
    i0, f0, o0, gg0 = gate_act(xp0[:B, :])
    c0 = i0 * gg0
    h0 = o0 * jnp.tanh(c0)
    # fused dot: [h0 | h1=0] @ wblk  -> only the top H rows of wblk matter
    fused = jnp.dot(h0, wblk[:H, :], preferred_element_type=f32)   # [B, 8H]
    rec0 = fused[:, :H4]                                           # h0 @ whh0
    i1, f1, o1, gg1 = gate_act(fused[:, H4:] + bg1b)
    c1 = i1 * gg1
    h1 = o1 * jnp.tanh(c1)

    # ---- remaining steps, fully unrolled (S static, tiny live values) ----
    for t in range(1, S):
        # layer 0: recurrent term was produced by last step's fused matmul
        g0 = xp0[t * B:(t + 1) * B, :] + rec0
        i0, f0, o0, gg0 = gate_act(g0)
        c0 = f0 * c0 + i0 * gg0
        h0 = o0 * jnp.tanh(c0)
        # ONE fused matmul: [h0_new | h1_prev] @ [[whh0, wih1],[0, whh1]]
        fused = jnp.dot(jnp.concatenate([h0, h1], axis=-1), wblk,
                        preferred_element_type=f32)                # [B, 8H]
        rec0 = fused[:, :H4]                # layer-0 recurrent term for t+1
        g1 = fused[:, H4:] + bg1b           # layer-1 gates for this step
        i1, f1, o1, gg1 = gate_act(g1)
        c1 = f1 * c1 + i1 * gg1
        h1 = o1 * jnp.tanh(c1)

    # ---- FFN2 on last-step top-layer hidden state ----
    hh = jnp.maximum(jnp.dot(h1, w3, preferred_element_type=f32) + b3, 0.0)
    out_ref[...] = jnp.dot(hh, w4, preferred_element_type=f32) + b4


def rv_predictor_forward(x, p):
    """x: [B, S, Din] (PyTorch batch_first layout). Returns [B, 1]."""
    B, S, Din = x.shape
    H = p["w1"].shape[1]
    H4, H8 = 4 * H, 8 * H
    Bp = ((B + 7) // 8) * 8                       # pad batch to sublane multiple

    # time-major + batch pad + flatten -> [S*Bp, Din] (one tiny XLA copy;
    # gives contiguous, aligned per-timestep row blocks inside the kernel).
    xt = jnp.transpose(x, (1, 0, 2))
    xt = jnp.pad(xt, ((0, 0), (0, Bp - B), (0, 0)))
    x2d = xt.reshape(S * Bp, Din)

    def repack(w):
        # [i|f|g|o] (PyTorch) -> [i|f|o|g] along the last (4H) axis.
        h = w.shape[-1] // 4
        return jnp.concatenate(
            [w[..., :2 * h], w[..., 3 * h:], w[..., 2 * h:3 * h]], axis=-1)

    wih0 = repack(p["wih0"]); whh0 = repack(p["whh0"]); bg0 = repack(p["b0"])
    wih1 = repack(p["wih1"]); whh1 = repack(p["whh1"]); bg1 = repack(p["b1l"])

    # fused per-step block weight: [[whh0, wih1],[0, whh1]]  -> [2H, 8H]
    wblk = jnp.concatenate(
        [jnp.concatenate([whh0, wih1], axis=1),
         jnp.concatenate([jnp.zeros((H, H4), jnp.float32), whh1], axis=1)],
        axis=0)

    # H-leading weight slab: [ w2 | wih0 | w3 | w4 ]  -> [H, 6H+1]
    wslab = jnp.concatenate([p["w2"], wih0, p["w3"], p["w4"]], axis=1)

    # bias slab: one row per bias, zero-padded to 8H lanes -> [6, 8H]
    def padrow(b):
        return jnp.pad(b, ((0, 0), (0, H8 - b.shape[1])))
    bias = jnp.concatenate(
        [padrow(p["b1"]), padrow(p["b2"]), padrow(bg0),
         padrow(bg1), padrow(p["b3"]), padrow(p["b4"])], axis=0)

    args = (x2d, p["w1"], wslab, wblk, bias)

    def fullspec(shape):
        n = len(shape)
        return pl.BlockSpec(shape, lambda i, n=n: (0,) * n)

    flops = (2 * S * Bp * (Din * H + H * H)        # hoisted FFN1
             + 2 * S * Bp * H * H4                 # hoisted L0 input proj
             + 2 * S * Bp * 2 * H * H8             # fused per-step matmul
             + 2 * Bp * (H * H + H))               # FFN2
    transcendentals = S * Bp * 2 * 5 * H           # sigmoid/tanh per cell
    bytes_accessed = sum(int(a.size) * 4 for a in args) + Bp * 4

    out = pl.pallas_call(
        rv_predictor_kernel,
        grid=(1,),
        in_specs=[fullspec(a.shape) for a in args],
        out_specs=fullspec((Bp, 1)),
        out_shape=jax.ShapeDtypeStruct((Bp, 1), jnp.float32),
        compiler_params=pltpu.CompilerParams(
            dimension_semantics=("arbitrary",)),
        cost_estimate=pl.CostEstimate(
            flops=int(flops),
            transcendentals=int(transcendentals),
            bytes_accessed=int(bytes_accessed)),
    )(*args)
    return out[:B]


def init_params(key, input_dim, hidden_dim):
    """Deterministic synthetic parameters (torch shapes, stored transposed,
    LSTM gate blocks in PyTorch [i|f|g|o] order, LSTM biases pre-summed)."""
    H = hidden_dim
    ks = iter(jax.random.split(key, 16))

    def rnd(shape, scale=0.1):
        return scale * jax.random.normal(next(ks), shape, jnp.float32)

    return {
        "w1":   rnd((input_dim, H)),   # ffn1.linear1.weight.T
        "b1":   rnd((1, H)),
        "w2":   rnd((H, H)),           # ffn1.linear2.weight.T
        "b2":   rnd((1, H)),
        "wih0": rnd((H, 4 * H)),       # lstm.weight_ih_l0.T
        "whh0": rnd((H, 4 * H)),       # lstm.weight_hh_l0.T
        "b0":   rnd((1, 4 * H)),       # bias_ih_l0 + bias_hh_l0 (combined)
        "wih1": rnd((H, 4 * H)),
        "whh1": rnd((H, 4 * H)),
        "b1l":  rnd((1, 4 * H)),
        "w3":   rnd((H, H)),           # ffn2.linear1.weight.T
        "b3":   rnd((1, H)),
        "w4":   rnd((H, 1)),           # ffn2.linear2.weight.T
        "b4":   rnd((1, 1)),
    }


def reference_forward(x, p):
    """Pure-JAX reference mirroring the PyTorch eval-mode forward."""
    B, S, Din = x.shape
    H = p["w1"].shape[1]
    a = jnp.maximum(x @ p["w1"] + p["b1"], 0.0)
    z = a @ p["w2"] + p["b2"]                        # [B, S, H]

    def cell(xt, h_, c_, wih, whh, bb):
        g = xt @ wih + h_ @ whh + bb
        i = jax.nn.sigmoid(g[:, :H]); f = jax.nn.sigmoid(g[:, H:2 * H])
        gg = jnp.tanh(g[:, 2 * H:3 * H]); o = jax.nn.sigmoid(g[:, 3 * H:])
        c = f * c_ + i * gg
        return o * jnp.tanh(c), c

    h0 = c0 = h1 = c1 = jnp.zeros((B, H), jnp.float32)
    for t in range(S):
        h0, c0 = cell(z[:, t, :], h0, c0, p["wih0"], p["whh0"], p["b0"])
        h1, c1 = cell(h0, h1, c1, p["wih1"], p["whh1"], p["b1l"])
    hh = jnp.maximum(h1 @ p["w3"] + p["b3"], 0.0)
    return hh @ p["w4"] + p["b4"]


if __name__ == "__main__":
    B, S, INPUT_DIM, HIDDEN_DIM = 2, 8, 4, 32
    key = jax.random.PRNGKey(0)
    kx, kp = jax.random.split(key)

    x = jax.random.normal(kx, (B, S, INPUT_DIM), jnp.float32)
    params = init_params(kp, INPUT_DIM, HIDDEN_DIM)

    out = rv_predictor_forward(x, params)
    out = jax.block_until_ready(out)

    ref = reference_forward(x, params)
    assert out.shape == (B, 1), out.shape
    assert jnp.allclose(out, ref, rtol=2e-3, atol=2e-3), (out, ref)
    print("KERNEL_OK")
</pallas_src>

<mosaic_0001>
module attributes {stable_mosaic.version = 11 : i64} {
  func.func @rv_predictor_kernel(%arg0: i32, %arg1: memref<64x4xf32, #tpu.memory_space<vmem>>, %arg2: memref<4x32xf32, #tpu.memory_space<vmem>>, %arg3: memref<32x193xf32, #tpu.memory_space<vmem>>, %arg4: memref<64x256xf32, #tpu.memory_space<vmem>>, %arg5: memref<6x256xf32, #tpu.memory_space<vmem>>, %arg6: memref<8x1xf32, #tpu.memory_space<vmem>>) attributes {dimension_semantics = [#tpu.dimension_semantics<arbitrary>], iteration_bounds = array<i64: 1>, scalar_prefetch = 0 : i64, scratch_operands = 0 : i64, tpu.core_type = #tpu.core_type<tc>, window_params = [{pipeline_mode = #tpu.pipeline_mode<synchronous>, transform_indices = @transform_0, window_bounds = array<i64: 64, 4>}, {pipeline_mode = #tpu.pipeline_mode<synchronous>, transform_indices = @transform_1, window_bounds = array<i64: 4, 32>}, {pipeline_mode = #tpu.pipeline_mode<synchronous>, transform_indices = @transform_2, window_bounds = array<i64: 32, 193>}, {pipeline_mode = #tpu.pipeline_mode<synchronous>, transform_indices = @transform_3, window_bounds = array<i64: 64, 256>}, {pipeline_mode = #tpu.pipeline_mode<synchronous>, transform_indices = @transform_4, window_bounds = array<i64: 6, 256>}, {pipeline_mode = #tpu.pipeline_mode<synchronous>, transform_indices = @transform_5, window_bounds = array<i64: 8, 1>}]} {
    %c0 = arith.constant 0 : index
    %c0_0 = arith.constant 0 : index
    %0 = vector.load %arg3[%c0, %c0_0] : memref<32x193xf32, #tpu.memory_space<vmem>>, vector<32x193xf32>
    %1 = vector.extract_strided_slice %0 {offsets = [0, 0], sizes = [32, 32], strides = [1, 1]} : vector<32x193xf32> to vector<32x32xf32>
    %2 = vector.extract_strided_slice %0 {offsets = [0, 32], sizes = [32, 128], strides = [1, 1]} : vector<32x193xf32> to vector<32x128xf32>
    %3 = vector.extract_strided_slice %0 {offsets = [0, 160], sizes = [32, 32], strides = [1, 1]} : vector<32x193xf32> to vector<32x32xf32>
    %4 = vector.extract_strided_slice %0 {offsets = [0, 192], sizes = [32, 1], strides = [1, 1]} : vector<32x193xf32> to vector<32x1xf32>
    %c0_1 = arith.constant 0 : index
    %c0_2 = arith.constant 0 : index
    %5 = vector.load %arg5[%c0_1, %c0_2] : memref<6x256xf32, #tpu.memory_space<vmem>>, vector<6x256xf32>
    %6 = vector.extract_strided_slice %5 {offsets = [0, 0], sizes = [1, 32], strides = [1, 1]} : vector<6x256xf32> to vector<1x32xf32>
    %7 = vector.extract_strided_slice %5 {offsets = [1, 0], sizes = [1, 32], strides = [1, 1]} : vector<6x256xf32> to vector<1x32xf32>
    %8 = vector.extract_strided_slice %5 {offsets = [2, 0], sizes = [1, 128], strides = [1, 1]} : vector<6x256xf32> to vector<1x128xf32>
    %9 = vector.extract_strided_slice %5 {offsets = [3, 0], sizes = [1, 128], strides = [1, 1]} : vector<6x256xf32> to vector<1x128xf32>
    %10 = vector.extract_strided_slice %5 {offsets = [4, 0], sizes = [1, 32], strides = [1, 1]} : vector<6x256xf32> to vector<1x32xf32>
    %11 = vector.extract_strided_slice %5 {offsets = [5, 0], sizes = [1, 1], strides = [1, 1]} : vector<6x256xf32> to vector<1x1xf32>
    %c0_3 = arith.constant 0 : index
    %c0_4 = arith.constant 0 : index
    %12 = vector.load %arg1[%c0_3, %c0_4] : memref<64x4xf32, #tpu.memory_space<vmem>>, vector<64x4xf32>
    %c0_5 = arith.constant 0 : index
    %c0_6 = arith.constant 0 : index
    %13 = vector.load %arg2[%c0_5, %c0_6] : memref<4x32xf32, #tpu.memory_space<vmem>>, vector<4x32xf32>
    %cst = arith.constant dense<0.000000e+00> : vector<64x32xf32>
    %14 = tpu.matmul %12, %13, %cst {dimension_numbers = #tpu.dot_dimension_numbers<[1], [0], [0], [1], [0, 0, 1, 1], [], []>} : vector<64x4xf32>, vector<4x32xf32>, vector<64x32xf32> -> vector<64x32xf32>
    %15 = vector.broadcast %6 : vector<1x32xf32> to vector<64x32xf32>
    %16 = arith.addf %14, %15 : vector<64x32xf32>
    %cst_7 = arith.constant 0.000000e+00 : f32
    %17 = vector.broadcast %cst_7 : f32 to vector<64x32xf32>
    %18 = arith.maximumf %16, %17 : vector<64x32xf32>
    %cst_8 = arith.constant dense<0.000000e+00> : vector<64x32xf32>
    %19 = tpu.matmul %18, %1, %cst_8 {dimension_numbers = #tpu.dot_dimension_numbers<[1], [0], [0], [1], [0, 0, 1, 1], [], []>} : vector<64x32xf32>, vector<32x32xf32>, vector<64x32xf32> -> vector<64x32xf32>
    %20 = vector.broadcast %7 : vector<1x32xf32> to vector<64x32xf32>
    %21 = arith.addf %19, %20 : vector<64x32xf32>
    %cst_9 = arith.constant dense<0.000000e+00> : vector<64x128xf32>
    %22 = tpu.matmul %21, %2, %cst_9 {dimension_numbers = #tpu.dot_dimension_numbers<[1], [0], [0], [1], [0, 0, 1, 1], [], []>} : vector<64x32xf32>, vector<32x128xf32>, vector<64x128xf32> -> vector<64x128xf32>
    %23 = vector.broadcast %8 : vector<1x128xf32> to vector<64x128xf32>
    %24 = arith.addf %22, %23 : vector<64x128xf32>
    %c0_10 = arith.constant 0 : index
    %c0_11 = arith.constant 0 : index
    %25 = vector.load %arg4[%c0_10, %c0_11] : memref<64x256xf32, #tpu.memory_space<vmem>>, vector<64x256xf32>
    %26 = vector.shape_cast %9 : vector<1x128xf32> to vector<1x128xf32>
    %27 = vector.broadcast %26 : vector<1x128xf32> to vector<8x128xf32>
    %28 = vector.extract_strided_slice %24 {offsets = [0, 0], sizes = [8, 128], strides = [1, 1]} : vector<64x128xf32> to vector<8x128xf32>
    %29 = vector.extract_strided_slice %28 {offsets = [0, 0], sizes = [8, 96], strides = [1, 1]} : vector<8x128xf32> to vector<8x96xf32>
    %30 = arith.negf %29 : vector<8x96xf32>
    %31 = math.exp %30 : vector<8x96xf32>
    %cst_12 = arith.constant 1.000000e+00 : f32
    %32 = vector.broadcast %cst_12 : f32 to vector<8x96xf32>
    %33 = arith.addf %32, %31 : vector<8x96xf32>
    %34 = arith.divf %32, %33 : vector<8x96xf32>
    %35 = vector.extract_strided_slice %28 {offsets = [0, 96], sizes = [8, 32], strides = [1, 1]} : vector<8x128xf32> to vector<8x32xf32>
    %36 = math.tanh %35 : vector<8x32xf32>
    %37 = vector.extract_strided_slice %34 {offsets = [0, 0], sizes = [8, 32], strides = [1, 1]} : vector<8x96xf32> to vector<8x32xf32>
    %38 = vector.extract_strided_slice %34 {offsets = [0, 64], sizes = [8, 32], strides = [1, 1]} : vector<8x96xf32> to vector<8x32xf32>
    %39 = arith.mulf %37, %36 : vector<8x32xf32>
    %40 = math.tanh %39 : vector<8x32xf32>
    %41 = arith.mulf %38, %40 : vector<8x32xf32>
    %42 = vector.extract_strided_slice %25 {offsets = [0, 0], sizes = [32, 256], strides = [1, 1]} : vector<64x256xf32> to vector<32x256xf32>
    %cst_13 = arith.constant dense<0.000000e+00> : vector<8x256xf32>
    %43 = tpu.matmul %41, %42, %cst_13 {dimension_numbers = #tpu.dot_dimension_numbers<[1], [0], [0], [1], [0, 0, 1, 1], [], []>} : vector<8x32xf32>, vector<32x256xf32>, vector<8x256xf32> -> vector<8x256xf32>
    %44 = vector.extract_strided_slice %43 {offsets = [0, 0], sizes = [8, 128], strides = [1, 1]} : vector<8x256xf32> to vector<8x128xf32>
    %45 = vector.extract_strided_slice %43 {offsets = [0, 128], sizes = [8, 128], strides = [1, 1]} : vector<8x256xf32> to vector<8x128xf32>
    %46 = arith.addf %45, %27 : vector<8x128xf32>
    %47 = vector.extract_strided_slice %46 {offsets = [0, 0], sizes = [8, 96], strides = [1, 1]} : vector<8x128xf32> to vector<8x96xf32>
    %48 = arith.negf %47 : vector<8x96xf32>
    %49 = math.exp %48 : vector<8x96xf32>
    %cst_14 = arith.constant 1.000000e+00 : f32
    %50 = vector.broadcast %cst_14 : f32 to vector<8x96xf32>
    %51 = arith.addf %50, %49 : vector<8x96xf32>
    %52 = arith.divf %50, %51 : vector<8x96xf32>
    %53 = vector.extract_strided_slice %46 {offsets = [0, 96], sizes = [8, 32], strides = [1, 1]} : vector<8x128xf32> to vector<8x32xf32>
    %54 = math.tanh %53 : vector<8x32xf32>
    %55 = vector.extract_strided_slice %52 {offsets = [0, 0], sizes = [8, 32], strides = [1, 1]} : vector<8x96xf32> to vector<8x32xf32>
    %56 = vector.extract_strided_slice %52 {offsets = [0, 64], sizes = [8, 32], strides = [1, 1]} : vector<8x96xf32> to vector<8x32xf32>
    %57 = arith.mulf %55, %54 : vector<8x32xf32>
    %58 = math.tanh %57 : vector<8x32xf32>
    %59 = arith.mulf %56, %58 : vector<8x32xf32>
    %60 = vector.extract_strided_slice %24 {offsets = [8, 0], sizes = [8, 128], strides = [1, 1]} : vector<64x128xf32> to vector<8x128xf32>
    %61 = arith.addf %60, %44 : vector<8x128xf32>
    %62 = vector.extract_strided_slice %61 {offsets = [0, 0], sizes = [8, 96], strides = [1, 1]} : vector<8x128xf32> to vector<8x96xf32>
    %63 = arith.negf %62 : vector<8x96xf32>
    %64 = math.exp %63 : vector<8x96xf32>
    %cst_15 = arith.constant 1.000000e+00 : f32
    %65 = vector.broadcast %cst_15 : f32 to vector<8x96xf32>
    %66 = arith.addf %65, %64 : vector<8x96xf32>
    %67 = arith.divf %65, %66 : vector<8x96xf32>
    %68 = vector.extract_strided_slice %61 {offsets = [0, 96], sizes = [8, 32], strides = [1, 1]} : vector<8x128xf32> to vector<8x32xf32>
    %69 = math.tanh %68 : vector<8x32xf32>
    %70 = vector.extract_strided_slice %67 {offsets = [0, 0], sizes = [8, 32], strides = [1, 1]} : vector<8x96xf32> to vector<8x32xf32>
    %71 = vector.extract_strided_slice %67 {offsets = [0, 32], sizes = [8, 32], strides = [1, 1]} : vector<8x96xf32> to vector<8x32xf32>
    %72 = vector.extract_strided_slice %67 {offsets = [0, 64], sizes = [8, 32], strides = [1, 1]} : vector<8x96xf32> to vector<8x32xf32>
    %73 = arith.mulf %71, %39 : vector<8x32xf32>
    %74 = arith.mulf %70, %69 : vector<8x32xf32>
    %75 = arith.addf %73, %74 : vector<8x32xf32>
    %76 = math.tanh %75 : vector<8x32xf32>
    %77 = arith.mulf %72, %76 : vector<8x32xf32>
    %78 = tpu.concatenate %77, %59 in 1 : vector<8x32xf32>, vector<8x32xf32> -> vector<8x64xf32>
    %cst_16 = arith.constant dense<0.000000e+00> : vector<8x256xf32>
    %79 = tpu.matmul %78, %25, %cst_16 {dimension_numbers = #tpu.dot_dimension_numbers<[1], [0], [0], [1], [0, 0, 1, 1], [], []>} : vector<8x64xf32>, vector<64x256xf32>, vector<8x256xf32> -> vector<8x256xf32>
    %80 = vector.extract_strided_slice %79 {offsets = [0, 0], sizes = [8, 128], strides = [1, 1]} : vector<8x256xf32> to vector<8x128xf32>
    %81 = vector.extract_strided_slice %79 {offsets = [0, 128], sizes = [8, 128], strides = [1, 1]} : vector<8x256xf32> to vector<8x128xf32>
    %82 = arith.addf %81, %27 : vector<8x128xf32>
    %83 = vector.extract_strided_slice %82 {offsets = [0, 0], sizes = [8, 96], strides = [1, 1]} : vector<8x128xf32> to vector<8x96xf32>
    %84 = arith.negf %83 : vector<8x96xf32>
    %85 = math.exp %84 : vector<8x96xf32>
    %cst_17 = arith.constant 1.000000e+00 : f32
    %86 = vector.broadcast %cst_17 : f32 to vector<8x96xf32>
    %87 = arith.addf %86, %85 : vector<8x96xf32>
    %88 = arith.divf %86, %87 : vector<8x96xf32>
    %89 = vector.extract_strided_slice %82 {offsets = [0, 96], sizes = [8, 32], strides = [1, 1]} : vector<8x128xf32> to vector<8x32xf32>
    %90 = math.tanh %89 : vector<8x32xf32>
    %91 = vector.extract_strided_slice %88 {offsets = [0, 0], sizes = [8, 32], strides = [1, 1]} : vector<8x96xf32> to vector<8x32xf32>
    %92 = vector.extract_strided_slice %88 {offsets = [0, 32], sizes = [8, 32], strides = [1, 1]} : vector<8x96xf32> to vector<8x32xf32>
    %93 = vector.extract_strided_slice %88 {offsets = [0, 64], sizes = [8, 32], strides = [1, 1]} : vector<8x96xf32> to vector<8x32xf32>
    %94 = arith.mulf %92, %57 : vector<8x32xf32>
    %95 = arith.mulf %91, %90 : vector<8x32xf32>
    %96 = arith.addf %94, %95 : vector<8x32xf32>
    %97 = math.tanh %96 : vector<8x32xf32>
    %98 = arith.mulf %93, %97 : vector<8x32xf32>
    %99 = vector.extract_strided_slice %24 {offsets = [16, 0], sizes = [8, 128], strides = [1, 1]} : vector<64x128xf32> to vector<8x128xf32>
    %100 = arith.addf %99, %80 : vector<8x128xf32>
    %101 = vector.extract_strided_slice %100 {offsets = [0, 0], sizes = [8, 96], strides = [1, 1]} : vector<8x128xf32> to vector<8x96xf32>
    %102 = arith.negf %101 : vector<8x96xf32>
    %103 = math.exp %102 : vector<8x96xf32>
    %cst_18 = arith.constant 1.000000e+00 : f32
    %104 = vector.broadcast %cst_18 : f32 to vector<8x96xf32>
    %105 = arith.addf %104, %103 : vector<8x96xf32>
    %106 = arith.divf %104, %105 : vector<8x96xf32>
    %107 = vector.extract_strided_slice %100 {offsets = [0, 96], sizes = [8, 32], strides = [1, 1]} : vector<8x128xf32> to vector<8x32xf32>
    %108 = math.tanh %107 : vector<8x32xf32>
    %109 = vector.extract_strided_slice %106 {offsets = [0, 0], sizes = [8, 32], strides = [1, 1]} : vector<8x96xf32> to vector<8x32xf32>
    %110 = vector.extract_strided_slice %106 {offsets = [0, 32], sizes = [8, 32], strides = [1, 1]} : vector<8x96xf32> to vector<8x32xf32>
    %111 = vector.extract_strided_slice %106 {offsets = [0, 64], sizes = [8, 32], strides = [1, 1]} : vector<8x96xf32> to vector<8x32xf32>
    %112 = arith.mulf %110, %75 : vector<8x32xf32>
    %113 = arith.mulf %109, %108 : vector<8x32xf32>
    %114 = arith.addf %112, %113 : vector<8x32xf32>
    %115 = math.tanh %114 : vector<8x32xf32>
    %116 = arith.mulf %111, %115 : vector<8x32xf32>
    %117 = tpu.concatenate %116, %98 in 1 : vector<8x32xf32>, vector<8x32xf32> -> vector<8x64xf32>
    %cst_19 = arith.constant dense<0.000000e+00> : vector<8x256xf32>
    %118 = tpu.matmul %117, %25, %cst_19 {dimension_numbers = #tpu.dot_dimension_numbers<[1], [0], [0], [1], [0, 0, 1, 1], [], []>} : vector<8x64xf32>, vector<64x256xf32>, vector<8x256xf32> -> vector<8x256xf32>
    %119 = vector.extract_strided_slice %118 {offsets = [0, 0], sizes = [8, 128], strides = [1, 1]} : vector<8x256xf32> to vector<8x128xf32>
    %120 = vector.extract_strided_slice %118 {offsets = [0, 128], sizes = [8, 128], strides = [1, 1]} : vector<8x256xf32> to vector<8x128xf32>
    %121 = arith.addf %120, %27 : vector<8x128xf32>
    %122 = vector.extract_strided_slice %121 {offsets = [0, 0], sizes = [8, 96], strides = [1, 1]} : vector<8x128xf32> to vector<8x96xf32>
    %123 = arith.negf %122 : vector<8x96xf32>
    %124 = math.exp %123 : vector<8x96xf32>
    %cst_20 = arith.constant 1.000000e+00 : f32
    %125 = vector.broadcast %cst_20 : f32 to vector<8x96xf32>
    %126 = arith.addf %125, %124 : vector<8x96xf32>
    %127 = arith.divf %125, %126 : vector<8x96xf32>
    %128 = vector.extract_strided_slice %121 {offsets = [0, 96], sizes = [8, 32], strides = [1, 1]} : vector<8x128xf32> to vector<8x32xf32>
    %129 = math.tanh %128 : vector<8x32xf32>
    %130 = vector.extract_strided_slice %127 {offsets = [0, 0], sizes = [8, 32], strides = [1, 1]} : vector<8x96xf32> to vector<8x32xf32>
    %131 = vector.extract_strided_slice %127 {offsets = [0, 32], sizes = [8, 32], strides = [1, 1]} : vector<8x96xf32> to vector<8x32xf32>
    %132 = vector.extract_strided_slice %127 {offsets = [0, 64], sizes = [8, 32], strides = [1, 1]} : vector<8x96xf32> to vector<8x32xf32>
    %133 = arith.mulf %131, %96 : vector<8x32xf32>
    %134 = arith.mulf %130, %129 : vector<8x32xf32>
    %135 = arith.addf %133, %134 : vector<8x32xf32>
    %136 = math.tanh %135 : vector<8x32xf32>
    %137 = arith.mulf %132, %136 : vector<8x32xf32>
    %138 = vector.extract_strided_slice %24 {offsets = [24, 0], sizes = [8, 128], strides = [1, 1]} : vector<64x128xf32> to vector<8x128xf32>
    %139 = arith.addf %138, %119 : vector<8x128xf32>
    %140 = vector.extract_strided_slice %139 {offsets = [0, 0], sizes = [8, 96], strides = [1, 1]} : vector<8x128xf32> to vector<8x96xf32>
    %141 = arith.negf %140 : vector<8x96xf32>
    %142 = math.exp %141 : vector<8x96xf32>
    %cst_21 = arith.constant 1.000000e+00 : f32
    %143 = vector.broadcast %cst_21 : f32 to vector<8x96xf32>
    %144 = arith.addf %143, %142 : vector<8x96xf32>
    %145 = arith.divf %143, %144 : vector<8x96xf32>
    %146 = vector.extract_strided_slice %139 {offsets = [0, 96], sizes = [8, 32], strides = [1, 1]} : vector<8x128xf32> to vector<8x32xf32>
    %147 = math.tanh %146 : vector<8x32xf32>
    %148 = vector.extract_strided_slice %145 {offsets = [0, 0], sizes = [8, 32], strides = [1, 1]} : vector<8x96xf32> to vector<8x32xf32>
    %149 = vector.extract_strided_slice %145 {offsets = [0, 32], sizes = [8, 32], strides = [1, 1]} : vector<8x96xf32> to vector<8x32xf32>
    %150 = vector.extract_strided_slice %145 {offsets = [0, 64], sizes = [8, 32], strides = [1, 1]} : vector<8x96xf32> to vector<8x32xf32>
    %151 = arith.mulf %149, %114 : vector<8x32xf32>
    %152 = arith.mulf %148, %147 : vector<8x32xf32>
    %153 = arith.addf %151, %152 : vector<8x32xf32>
    %154 = math.tanh %153 : vector<8x32xf32>
    %155 = arith.mulf %150, %154 : vector<8x32xf32>
    %156 = tpu.concatenate %155, %137 in 1 : vector<8x32xf32>, vector<8x32xf32> -> vector<8x64xf32>
    %cst_22 = arith.constant dense<0.000000e+00> : vector<8x256xf32>
    %157 = tpu.matmul %156, %25, %cst_22 {dimension_numbers = #tpu.dot_dimension_numbers<[1], [0], [0], [1], [0, 0, 1, 1], [], []>} : vector<8x64xf32>, vector<64x256xf32>, vector<8x256xf32> -> vector<8x256xf32>
    %158 = vector.extract_strided_slice %157 {offsets = [0, 0], sizes = [8, 128], strides = [1, 1]} : vector<8x256xf32> to vector<8x128xf32>
    %159 = vector.extract_strided_slice %157 {offsets = [0, 128], sizes = [8, 128], strides = [1, 1]} : vector<8x256xf32> to vector<8x128xf32>
    %160 = arith.addf %159, %27 : vector<8x128xf32>
    %161 = vector.extract_strided_slice %160 {offsets = [0, 0], sizes = [8, 96], strides = [1, 1]} : vector<8x128xf32> to vector<8x96xf32>
    %162 = arith.negf %161 : vector<8x96xf32>
    %163 = math.exp %162 : vector<8x96xf32>
    %cst_23 = arith.constant 1.000000e+00 : f32
    %164 = vector.broadcast %cst_23 : f32 to vector<8x96xf32>
    %165 = arith.addf %164, %163 : vector<8x96xf32>
    %166 = arith.divf %164, %165 : vector<8x96xf32>
    %167 = vector.extract_strided_slice %160 {offsets = [0, 96], sizes = [8, 32], strides = [1, 1]} : vector<8x128xf32> to vector<8x32xf32>
    %168 = math.tanh %167 : vector<8x32xf32>
    %169 = vector.extract_strided_slice %166 {offsets = [0, 0], sizes = [8, 32], strides = [1, 1]} : vector<8x96xf32> to vector<8x32xf32>
    %170 = vector.extract_strided_slice %166 {offsets = [0, 32], sizes = [8, 32], strides = [1, 1]} : vector<8x96xf32> to vector<8x32xf32>
    %171 = vector.extract_strided_slice %166 {offsets = [0, 64], sizes = [8, 32], strides = [1, 1]} : vector<8x96xf32> to vector<8x32xf32>
    %172 = arith.mulf %170, %135 : vector<8x32xf32>
    %173 = arith.mulf %169, %168 : vector<8x32xf32>
    %174 = arith.addf %172, %173 : vector<8x32xf32>
    %175 = math.tanh %174 : vector<8x32xf32>
    %176 = arith.mulf %171, %175 : vector<8x32xf32>
    %177 = vector.extract_strided_slice %24 {offsets = [32, 0], sizes = [8, 128], strides = [1, 1]} : vector<64x128xf32> to vector<8x128xf32>
    %178 = arith.addf %177, %158 : vector<8x128xf32>
    %179 = vector.extract_strided_slice %178 {offsets = [0, 0], sizes = [8, 96], strides = [1, 1]} : vector<8x128xf32> to vector<8x96xf32>
    %180 = arith.negf %179 : vector<8x96xf32>
    %181 = math.exp %180 : vector<8x96xf32>
    %cst_24 = arith.constant 1.000000e+00 : f32
    %182 = vector.broadcast %cst_24 : f32 to vector<8x96xf32>
    %183 = arith.addf %182, %181 : vector<8x96xf32>
    %184 = arith.divf %182, %183 : vector<8x96xf32>
    %185 = vector.extract_strided_slice %178 {offsets = [0, 96], sizes = [8, 32], strides = [1, 1]} : vector<8x128xf32> to vector<8x32xf32>
    %186 = math.tanh %185 : vector<8x32xf32>
    %187 = vector.extract_strided_slice %184 {offsets = [0, 0], sizes = [8, 32], strides = [1, 1]} : vector<8x96xf32> to vector<8x32xf32>
    %188 = vector.extract_strided_slice %184 {offsets = [0, 32], sizes = [8, 32], strides = [1, 1]} : vector<8x96xf32> to vector<8x32xf32>
    %189 = vector.extract_strided_slice %184 {offsets = [0, 64], sizes = [8, 32], strides = [1, 1]} : vector<8x96xf32> to vector<8x32xf32>
    %190 = arith.mulf %188, %153 : vector<8x32xf32>
    %191 = arith.mulf %187, %186 : vector<8x32xf32>
    %192 = arith.addf %190, %191 : vector<8x32xf32>
    %193 = math.tanh %192 : vector<8x32xf32>
    %194 = arith.mulf %189, %193 : vector<8x32xf32>
    %195 = tpu.concatenate %194, %176 in 1 : vector<8x32xf32>, vector<8x32xf32> -> vector<8x64xf32>
    %cst_25 = arith.constant dense<0.000000e+00> : vector<8x256xf32>
    %196 = tpu.matmul %195, %25, %cst_25 {dimension_numbers = #tpu.dot_dimension_numbers<[1], [0], [0], [1], [0, 0, 1, 1], [], []>} : vector<8x64xf32>, vector<64x256xf32>, vector<8x256xf32> -> vector<8x256xf32>
    %197 = vector.extract_strided_slice %196 {offsets = [0, 0], sizes = [8, 128], strides = [1, 1]} : vector<8x256xf32> to vector<8x128xf32>
    %198 = vector.extract_strided_slice %196 {offsets = [0, 128], sizes = [8, 128], strides = [1, 1]} : vector<8x256xf32> to vector<8x128xf32>
    %199 = arith.addf %198, %27 : vector<8x128xf32>
    %200 = vector.extract_strided_slice %199 {offsets = [0, 0], sizes = [8, 96], strides = [1, 1]} : vector<8x128xf32> to vector<8x96xf32>
    %201 = arith.negf %200 : vector<8x96xf32>
    %202 = math.exp %201 : vector<8x96xf32>
    %cst_26 = arith.constant 1.000000e+00 : f32
    %203 = vector.broadcast %cst_26 : f32 to vector<8x96xf32>
    %204 = arith.addf %203, %202 : vector<8x96xf32>
    %205 = arith.divf %203, %204 : vector<8x96xf32>
    %206 = vector.extract_strided_slice %199 {offsets = [0, 96], sizes = [8, 32], strides = [1, 1]} : vector<8x128xf32> to vector<8x32xf32>
    %207 = math.tanh %206 : vector<8x32xf32>
    %208 = vector.extract_strided_slice %205 {offsets = [0, 0], sizes = [8, 32], strides = [1, 1]} : vector<8x96xf32> to vector<8x32xf32>
    %209 = vector.extract_strided_slice %205 {offsets = [0, 32], sizes = [8, 32], strides = [1, 1]} : vector<8x96xf32> to vector<8x32xf32>
    %210 = vector.extract_strided_slice %205 {offsets = [0, 64], sizes = [8, 32], strides = [1, 1]} : vector<8x96xf32> to vector<8x32xf32>
    %211 = arith.mulf %209, %174 : vector<8x32xf32>
    %212 = arith.mulf %208, %207 : vector<8x32xf32>
    %213 = arith.addf %211, %212 : vector<8x32xf32>
    %214 = math.tanh %213 : vector<8x32xf32>
    %215 = arith.mulf %210, %214 : vector<8x32xf32>
    %216 = vector.extract_strided_slice %24 {offsets = [40, 0], sizes = [8, 128], strides = [1, 1]} : vector<64x128xf32> to vector<8x128xf32>
    %217 = arith.addf %216, %197 : vector<8x128xf32>
    %218 = vector.extract_strided_slice %217 {offsets = [0, 0], sizes = [8, 96], strides = [1, 1]} : vector<8x128xf32> to vector<8x96xf32>
    %219 = arith.negf %218 : vector<8x96xf32>
    %220 = math.exp %219 : vector<8x96xf32>
    %cst_27 = arith.constant 1.000000e+00 : f32
    %221 = vector.broadcast %cst_27 : f32 to vector<8x96xf32>
    %222 = arith.addf %221, %220 : vector<8x96xf32>
    %223 = arith.divf %221, %222 : vector<8x96xf32>
    %224 = vector.extract_strided_slice %217 {offsets = [0, 96], sizes = [8, 32], strides = [1, 1]} : vector<8x128xf32> to vector<8x32xf32>
    %225 = math.tanh %224 : vector<8x32xf32>
    %226 = vector.extract_strided_slice %223 {offsets = [0, 0], sizes = [8, 32], strides = [1, 1]} : vector<8x96xf32> to vector<8x32xf32>
    %227 = vector.extract_strided_slice %223 {offsets = [0, 32], sizes = [8, 32], strides = [1, 1]} : vector<8x96xf32> to vector<8x32xf32>
    %228 = vector.extract_strided_slice %223 {offsets = [0, 64], sizes = [8, 32], strides = [1, 1]} : vector<8x96xf32> to vector<8x32xf32>
    %229 = arith.mulf %227, %192 : vector<8x32xf32>
    %230 = arith.mulf %226, %225 : vector<8x32xf32>
    %231 = arith.addf %229, %230 : vector<8x32xf32>
    %232 = math.tanh %231 : vector<8x32xf32>
    %233 = arith.mulf %228, %232 : vector<8x32xf32>
    %234 = tpu.concatenate %233, %215 in 1 : vector<8x32xf32>, vector<8x32xf32> -> vector<8x64xf32>
    %cst_28 = arith.constant dense<0.000000e+00> : vector<8x256xf32>
    %235 = tpu.matmul %234, %25, %cst_28 {dimension_numbers = #tpu.dot_dimension_numbers<[1], [0], [0], [1], [0, 0, 1, 1], [], []>} : vector<8x64xf32>, vector<64x256xf32>, vector<8x256xf32> -> vector<8x256xf32>
    %236 = vector.extract_strided_slice %235 {offsets = [0, 0], sizes = [8, 128], strides = [1, 1]} : vector<8x256xf32> to vector<8x128xf32>
    %237 = vector.extract_strided_slice %235 {offsets = [0, 128], sizes = [8, 128], strides = [1, 1]} : vector<8x256xf32> to vector<8x128xf32>
    %238 = arith.addf %237, %27 : vector<8x128xf32>
    %239 = vector.extract_strided_slice %238 {offsets = [0, 0], sizes = [8, 96], strides = [1, 1]} : vector<8x128xf32> to vector<8x96xf32>
    %240 = arith.negf %239 : vector<8x96xf32>
    %241 = math.exp %240 : vector<8x96xf32>
    %cst_29 = arith.constant 1.000000e+00 : f32
    %242 = vector.broadcast %cst_29 : f32 to vector<8x96xf32>
    %243 = arith.addf %242, %241 : vector<8x96xf32>
    %244 = arith.divf %242, %243 : vector<8x96xf32>
    %245 = vector.extract_strided_slice %238 {offsets = [0, 96], sizes = [8, 32], strides = [1, 1]} : vector<8x128xf32> to vector<8x32xf32>
    %246 = math.tanh %245 : vector<8x32xf32>
    %247 = vector.extract_strided_slice %244 {offsets = [0, 0], sizes = [8, 32], strides = [1, 1]} : vector<8x96xf32> to vector<8x32xf32>
    %248 = vector.extract_strided_slice %244 {offsets = [0, 32], sizes = [8, 32], strides = [1, 1]} : vector<8x96xf32> to vector<8x32xf32>
    %249 = vector.extract_strided_slice %244 {offsets = [0, 64], sizes = [8, 32], strides = [1, 1]} : vector<8x96xf32> to vector<8x32xf32>
    %250 = arith.mulf %248, %213 : vector<8x32xf32>
    %251 = arith.mulf %247, %246 : vector<8x32xf32>
    %252 = arith.addf %250, %251 : vector<8x32xf32>
    %253 = math.tanh %252 : vector<8x32xf32>
    %254 = arith.mulf %249, %253 : vector<8x32xf32>
    %255 = vector.extract_strided_slice %24 {offsets = [48, 0], sizes = [8, 128], strides = [1, 1]} : vector<64x128xf32> to vector<8x128xf32>
    %256 = arith.addf %255, %236 : vector<8x128xf32>
    %257 = vector.extract_strided_slice %256 {offsets = [0, 0], sizes = [8, 96], strides = [1, 1]} : vector<8x128xf32> to vector<8x96xf32>
    %258 = arith.negf %257 : vector<8x96xf32>
    %259 = math.exp %258 : vector<8x96xf32>
    %cst_30 = arith.constant 1.000000e+00 : f32
    %260 = vector.broadcast %cst_30 : f32 to vector<8x96xf32>
    %261 = arith.addf %260, %259 : vector<8x96xf32>
    %262 = arith.divf %260, %261 : vector<8x96xf32>
    %263 = vector.extract_strided_slice %256 {offsets = [0, 96], sizes = [8, 32], strides = [1, 1]} : vector<8x128xf32> to vector<8x32xf32>
    %264 = math.tanh %263 : vector<8x32xf32>
    %265 = vector.extract_strided_slice %262 {offsets = [0, 0], sizes = [8, 32], strides = [1, 1]} : vector<8x96xf32> to vector<8x32xf32>
    %266 = vector.extract_strided_slice %262 {offsets = [0, 32], sizes = [8, 32], strides = [1, 1]} : vector<8x96xf32> to vector<8x32xf32>
    %267 = vector.extract_strided_slice %262 {offsets = [0, 64], sizes = [8, 32], strides = [1, 1]} : vector<8x96xf32> to vector<8x32xf32>
    %268 = arith.mulf %266, %231 : vector<8x32xf32>
    %269 = arith.mulf %265, %264 : vector<8x32xf32>
    %270 = arith.addf %268, %269 : vector<8x32xf32>
    %271 = math.tanh %270 : vector<8x32xf32>
    %272 = arith.mulf %267, %271 : vector<8x32xf32>
    %273 = tpu.concatenate %272, %254 in 1 : vector<8x32xf32>, vector<8x32xf32> -> vector<8x64xf32>
    %cst_31 = arith.constant dense<0.000000e+00> : vector<8x256xf32>
    %274 = tpu.matmul %273, %25, %cst_31 {dimension_numbers = #tpu.dot_dimension_numbers<[1], [0], [0], [1], [0, 0, 1, 1], [], []>} : vector<8x64xf32>, vector<64x256xf32>, vector<8x256xf32> -> vector<8x256xf32>
    %275 = vector.extract_strided_slice %274 {offsets = [0, 0], sizes = [8, 128], strides = [1, 1]} : vector<8x256xf32> to vector<8x128xf32>
    %276 = vector.extract_strided_slice %274 {offsets = [0, 128], sizes = [8, 128], strides = [1, 1]} : vector<8x256xf32> to vector<8x128xf32>
    %277 = arith.addf %276, %27 : vector<8x128xf32>
    %278 = vector.extract_strided_slice %277 {offsets = [0, 0], sizes = [8, 96], strides = [1, 1]} : vector<8x128xf32> to vector<8x96xf32>
    %279 = arith.negf %278 : vector<8x96xf32>
    %280 = math.exp %279 : vector<8x96xf32>
    %cst_32 = arith.constant 1.000000e+00 : f32
    %281 = vector.broadcast %cst_32 : f32 to vector<8x96xf32>
    %282 = arith.addf %281, %280 : vector<8x96xf32>
    %283 = arith.divf %281, %282 : vector<8x96xf32>
    %284 = vector.extract_strided_slice %277 {offsets = [0, 96], sizes = [8, 32], strides = [1, 1]} : vector<8x128xf32> to vector<8x32xf32>
    %285 = math.tanh %284 : vector<8x32xf32>
    %286 = vector.extract_strided_slice %283 {offsets = [0, 0], sizes = [8, 32], strides = [1, 1]} : vector<8x96xf32> to vector<8x32xf32>
    %287 = vector.extract_strided_slice %283 {offsets = [0, 32], sizes = [8, 32], strides = [1, 1]} : vector<8x96xf32> to vector<8x32xf32>
    %288 = vector.extract_strided_slice %283 {offsets = [0, 64], sizes = [8, 32], strides = [1, 1]} : vector<8x96xf32> to vector<8x32xf32>
    %289 = arith.mulf %287, %252 : vector<8x32xf32>
    %290 = arith.mulf %286, %285 : vector<8x32xf32>
    %291 = arith.addf %289, %290 : vector<8x32xf32>
    %292 = math.tanh %291 : vector<8x32xf32>
    %293 = arith.mulf %288, %292 : vector<8x32xf32>
    %294 = vector.extract_strided_slice %24 {offsets = [56, 0], sizes = [8, 128], strides = [1, 1]} : vector<64x128xf32> to vector<8x128xf32>
    %295 = arith.addf %294, %275 : vector<8x128xf32>
    %296 = vector.extract_strided_slice %295 {offsets = [0, 0], sizes = [8, 96], strides = [1, 1]} : vector<8x128xf32> to vector<8x96xf32>
    %297 = arith.negf %296 : vector<8x96xf32>
    %298 = math.exp %297 : vector<8x96xf32>
    %cst_33 = arith.constant 1.000000e+00 : f32
    %299 = vector.broadcast %cst_33 : f32 to vector<8x96xf32>
    %300 = arith.addf %299, %298 : vector<8x96xf32>
    %301 = arith.divf %299, %300 : vector<8x96xf32>
    %302 = vector.extract_strided_slice %295 {offsets = [0, 96], sizes = [8, 32], strides = [1, 1]} : vector<8x128xf32> to vector<8x32xf32>
    %303 = math.tanh %302 : vector<8x32xf32>
    %304 = vector.extract_strided_slice %301 {offsets = [0, 0], sizes = [8, 32], strides = [1, 1]} : vector<8x96xf32> to vector<8x32xf32>
    %305 = vector.extract_strided_slice %301 {offsets = [0, 32], sizes = [8, 32], strides = [1, 1]} : vector<8x96xf32> to vector<8x32xf32>
    %306 = vector.extract_strided_slice %301 {offsets = [0, 64], sizes = [8, 32], strides = [1, 1]} : vector<8x96xf32> to vector<8x32xf32>
    %307 = arith.mulf %305, %270 : vector<8x32xf32>
    %308 = arith.mulf %304, %303 : vector<8x32xf32>
    %309 = arith.addf %307, %308 : vector<8x32xf32>
    %310 = math.tanh %309 : vector<8x32xf32>
    %311 = arith.mulf %306, %310 : vector<8x32xf32>
    %312 = tpu.concatenate %311, %293 in 1 : vector<8x32xf32>, vector<8x32xf32> -> vector<8x64xf32>
    %cst_34 = arith.constant dense<0.000000e+00> : vector<8x256xf32>
    %313 = tpu.matmul %312, %25, %cst_34 {dimension_numbers = #tpu.dot_dimension_numbers<[1], [0], [0], [1], [0, 0, 1, 1], [], []>} : vector<8x64xf32>, vector<64x256xf32>, vector<8x256xf32> -> vector<8x256xf32>
    %314 = vector.extract_strided_slice %313 {offsets = [0, 128], sizes = [8, 128], strides = [1, 1]} : vector<8x256xf32> to vector<8x128xf32>
    %315 = arith.addf %314, %27 : vector<8x128xf32>
    %316 = vector.extract_strided_slice %315 {offsets = [0, 0], sizes = [8, 96], strides = [1, 1]} : vector<8x128xf32> to vector<8x96xf32>
    %317 = arith.negf %316 : vector<8x96xf32>
    %318 = math.exp %317 : vector<8x96xf32>
    %cst_35 = arith.constant 1.000000e+00 : f32
    %319 = vector.broadcast %cst_35 : f32 to vector<8x96xf32>
    %320 = arith.addf %319, %318 : vector<8x96xf32>
    %321 = arith.divf %319, %320 : vector<8x96xf32>
    %322 = vector.extract_strided_slice %315 {offsets = [0, 96], sizes = [8, 32], strides = [1, 1]} : vector<8x128xf32> to vector<8x32xf32>
    %323 = math.tanh %322 : vector<8x32xf32>
    %324 = vector.extract_strided_slice %321 {offsets = [0, 0], sizes = [8, 32], strides = [1, 1]} : vector<8x96xf32> to vector<8x32xf32>
    %325 = vector.extract_strided_slice %321 {offsets = [0, 32], sizes = [8, 32], strides = [1, 1]} : vector<8x96xf32> to vector<8x32xf32>
    %326 = vector.extract_strided_slice %321 {offsets = [0, 64], sizes = [8, 32], strides = [1, 1]} : vector<8x96xf32> to vector<8x32xf32>
    %327 = arith.mulf %325, %291 : vector<8x32xf32>
    %328 = arith.mulf %324, %323 : vector<8x32xf32>
    %329 = arith.addf %327, %328 : vector<8x32xf32>
    %330 = math.tanh %329 : vector<8x32xf32>
    %331 = arith.mulf %326, %330 : vector<8x32xf32>
    %cst_36 = arith.constant dense<0.000000e+00> : vector<8x32xf32>
    %332 = tpu.matmul %331, %3, %cst_36 {dimension_numbers = #tpu.dot_dimension_numbers<[1], [0], [0], [1], [0, 0, 1, 1], [], []>} : vector<8x32xf32>, vector<32x32xf32>, vector<8x32xf32> -> vector<8x32xf32>
    %333 = vector.broadcast %10 : vector<1x32xf32> to vector<8x32xf32>
    %334 = arith.addf %332, %333 : vector<8x32xf32>
    %cst_37 = arith.constant 0.000000e+00 : f32
    %335 = vector.broadcast %cst_37 : f32 to vector<8x32xf32>
    %336 = arith.maximumf %334, %335 : vector<8x32xf32>
    %cst_38 = arith.constant dense<0.000000e+00> : vector<8x1xf32>
    %337 = tpu.matmul %336, %4, %cst_38 {dimension_numbers = #tpu.dot_dimension_numbers<[1], [0], [0], [1], [0, 0, 1, 1], [], []>} : vector<8x32xf32>, vector<32x1xf32>, vector<8x1xf32> -> vector<8x1xf32>
    %338 = vector.broadcast %11 : vector<1x1xf32> to vector<8x1xf32>
    %339 = arith.addf %337, %338 : vector<8x1xf32>
    %c0_39 = arith.constant 0 : index
    %c0_40 = arith.constant 0 : index
    %340 = vector.load %arg6[%c0_39, %c0_40] : memref<8x1xf32, #tpu.memory_space<vmem>>, vector<8x1xf32>
    tpu.vector_store %arg6[%c0_39, %c0_40], %339 {strides = array<i32>} : memref<8x1xf32, #tpu.memory_space<vmem>>, vector<8x1xf32>,
    return
  }
  func.func @transform_0(%arg0: i32) -> (i32, i32) {
    %c0_i32 = arith.constant 0 : i32
    %c0_i32_0 = arith.constant 0 : i32
    %c0_i32_1 = arith.constant 0 : i32
    return %c0_i32, %c0_i32_0 : i32, i32
  }
  func.func @transform_1(%arg0: i32) -> (i32, i32) {
    %c0_i32 = arith.constant 0 : i32
    %c0_i32_0 = arith.constant 0 : i32
    %c0_i32_1 = arith.constant 0 : i32
    return %c0_i32, %c0_i32_0 : i32, i32
  }
  func.func @transform_2(%arg0: i32) -> (i32, i32) {
    %c0_i32 = arith.constant 0 : i32
    %c0_i32_0 = arith.constant 0 : i32
    %c0_i32_1 = arith.constant 0 : i32
    return %c0_i32, %c0_i32_0 : i32, i32
  }
  func.func @transform_3(%arg0: i32) -> (i32, i32) {
    %c0_i32 = arith.constant 0 : i32
    %c0_i32_0 = arith.constant 0 : i32
    %c0_i32_1 = arith.constant 0 : i32
    return %c0_i32, %c0_i32_0 : i32, i32
  }
  func.func @transform_4(%arg0: i32) -> (i32, i32) {
    %c0_i32 = arith.constant 0 : i32
    %c0_i32_0 = arith.constant 0 : i32
    %c0_i32_1 = arith.constant 0 : i32
    return %c0_i32, %c0_i32_0 : i32, i32
  }
  func.func @transform_5(%arg0: i32) -> (i32, i32) {
    %c0_i32 = arith.constant 0 : i32
    %c0_i32_0 = arith.constant 0 : i32
    %c0_i32_1 = arith.constant 0 : i32
    return %c0_i32, %c0_i32_0 : i32, i32
  }
}

</mosaic_0001>

<bundles_post_ra>
// kernel: tpu_custom_call.1
= control target key start
LH: loop header
LB: loop body
LE: loop exit
PB: predicated region body
PF: predicated region fallthrough
CT: control target
= control target key end

     0   :  { %10 = vsyncpa [#allocation3], 0  ;;  %s2721_s0 = inlined_call_operand.vmem [shape: f32[64,4], index: 0, kind: input, shape index: {}]   ;;  %s2722_s1 = inlined_call_operand.hbm [shape: f32[4,32], index: 1, kind: input, shape index: {}]   ;;  %s2723_s2 = inlined_call_operand.vmem [shape: f32[32,193], index: 2, kind: input, shape index: {}]   ;;  %s2724_s3 = inlined_call_operand.hbm [shape: f32[64,256], index: 3, kind: input, shape index: {}]   ;;  %s2725_s4 = inlined_call_operand.vmem [shape: f32[6,256], index: 4, kind: input, shape index: {}]   ;;  %s2726_s5 = inlined_call_operand.vmem [shape: f32[8,1], index: 5, kind: output, shape index: {}]  }
   0x1   :  { %11 = vsyncpa [#allocation5], 0  ;;  %s2300_s18 = smov [#allocation2]   ;;  %s2301_s20 = smov [#allocation4]  }
   0x2   :  { %s20_s19 = sshll.u32 %s2300_s18, 4  ;;  %s31_s21 = sshll.u32 %s2301_s20, 4  ;;  %s21_s19 = int_to_ptr.vmem [resolvable:$true] %s20_s19  ;;  %s2340_s21 = int_to_ptr.vmem [resolvable:$true] %s31_s21 }
   0x3   :  { %s2252_s24 = scalar_lea.hbm %s2722_s1, 64 }
   0x4   :  { %p2253_p0 = scmp.ne.s32.totalorder %s2722_s1, %s2252_s24  ;;  %p2256_p1 = scmp.lt.u32.totalorder %s2252_s24, %s2722_s1 }
   0x6   :  { %p2258_p2 = pnand %p2256_p1, %p2253_p0 }
   0x8   :  { %2261 = shalt.err (!%p2258_p2)
}
   0x9   :  { %s2262_s29 = scalar_lea.vmem %s21_s19, 64  ;;  %p2267_p4 = scmp.lt.s32.totalorder %s21_s19, %s21_s19 }
   0xa   :  { %p2263_p3 = scmp.ne.s32.totalorder %s21_s19, %s2262_s29  ;;  %p2268_p5 = scmp.lt.s32.totalorder %s2262_s29, %s2262_s29 }
   0xc   :  { %p2269_p6 = por %p2268_p5, %p2267_p4 }
   0xe   :  { %p2270_p7 = pnand %p2269_p6, %p2263_p3 }
  0x10   :  { %2273 = shalt.err (!%p2270_p7)
}
  0x11   :  { %23 = dma.hbm_to_vmem [thread:$0]  %s2722_s1, 64, %s21_s19, [#allocation3]  }
  0x12   :  { %s2274_s9 = scalar_lea.hbm %s2724_s3, 2048 }
  0x13   :  { %p2275_p8 = scmp.ne.s32.totalorder %s2724_s3, %s2274_s9  ;;  %p2278_p9 = scmp.lt.u32.totalorder %s2274_s9, %s2724_s3 }
  0x15   :  { %p2280_p10 = pnand %p2278_p9, %p2275_p8 }
  0x17   :  { %2283 = shalt.err (!%p2280_p10)
}
  0x18   :  { %s2284_s14 = scalar_lea.vmem %s2340_s21, 2048  ;;  %p2289_p12 = scmp.lt.s32.totalorder %s2340_s21, %s2340_s21 }
  0x19   :  { %p2285_p11 = scmp.ne.s32.totalorder %s2340_s21, %s2284_s14  ;;  %p2290_p13 = scmp.lt.s32.totalorder %s2284_s14, %s2284_s14 }
  0x1b   :  { %p2291_p0 = por %p2290_p13, %p2289_p12 }
  0x1d   :  { %p2292_p1 = pnand %p2291_p0, %p2285_p11 }
  0x1f   :  { %2295 = shalt.err (!%p2292_p1)
}
  0x20   :  { %s2302_s1 = smov 256   ;;  %s2303_s15 = smov 16  }
  0x21   :  { %37 = dma.hbm_to_vmem [thread:$0]  %s2724_s3, 2048, %s2340_s21, [#allocation5], %s2302_s1, %s2302_s1, %s2303_s15  }
  0x22   :  { %2296 = dma.done.wait [#allocation3], 64  }
  0x23   :  { %2297 = vsyncadd [#allocation3], 4294967232 }
  0x24   :  { %2298 = dma.done.wait [#allocation5], 2048  }
  0x25   :  { %2299 = vsyncadd [#allocation5], 4294965248  ;;  %vm93_vm0 = vcmask 1043456   ;;  %vm68_vm1 = vcmask 31744   ;;  %v63_v0 = vld [vmem:[#allocation2] sm:$0xf]  ;;  %v64_v24 = vlaneseq }
  0x26   :  { %v55_v1 = vld [vmem:[%s2721_s0] sm:$0xff]  ;;  %v56_v2 = vld [vmem:[%s2721_s0 + $0x8] sm:$0xff]  ;;  %1857 = vmatprep.subr.msk.mxu0 %vm93_vm0, %v63_v0  ;;  %v48_v3 = vld [vmem:[%s2723_s2 + $0x10] sm:$0xff]  ;;  %s2304_s17 = smov 96   ;;  %vm372_vm2 = vcmask 785408   ;;  %vm214_vm3 = vcmask 261120  }
  0x27   :  { %1859 = vmatprep.mubr.msk.f32.mxu0 %vm68_vm1, %v55_v1  ;;  %v46_v4 = vld [vmem:[%s2723_s2] sm:$0xff]  ;;  %1858 = vmatpush3.msk.msra.mxu0 %vm93_vm0, %v63_v0  ;;  %v52_v7 = vld [vmem:[%s2723_s2 + $0x30] sm:$0xff]  ;;  %v49_v9 = vld [vmem:[%s2723_s2 + $0x18] sm:$0xff]  ;;  %v2439_v25 = vshrl.u32 %v64_v24, 7  ;;  %s2307_s25 = smov 64   ;;  %vm681_vm4 = vcmask 523264  }
  0x28   :  { %v1933_v5 = vpack.c.bf16 %v48_v3, %v46_v4  ;;  %1860 = vmatmul.mubr.msk.f32.vlgmr.msra.gmra.mrb[0].mxu0 %vm68_vm1, %v56_v2  ;;  %v50_v6 = vld [vmem:[%s2723_s2 + $0x20] sm:$0xff]  ;;  %v47_v10 = vld [vmem:[%s2723_s2 + $0x8] sm:$0xff]  ;;  %v2405_v12 = vld [vmem:[%s2723_s2 + $0x38] sm:$0xff]  ;;  %v2096_v19 = vpack.i.bf16 %v49_v9, %v48_v3  ;;  %vm2309_vm5 = vmmov 0   ;;  %vm1755_vm6 = vcmask 7168  }
  0x29   :  { %v1937_v8 = vpack.c.bf16 %v52_v7, %v50_v6  ;;  %v2400_v11 = vld [vmem:[%s2723_s2 + $0x28] sm:$0xff]  ;;  %v2091_v13 = vpack.i.bf16 %v47_v10, %v46_v4  ;;  %v57_v16 = vld [vmem:[%s2721_s0 + $0x10] sm:$0xff]  ;;  %v58_v17 = vld [vmem:[%s2721_s0 + $0x18] sm:$0xff]  ;;  %v2106_v20 = vpack.i.bf16 %v2405_v12, %v52_v7  ;;  %v66_v26 = vsub.s32 0, %v2439_v25 }
  0x2a   :  { %1934 = vmatprep.subr.bf16.mxu1 %v1933_v5  ;;  %v2116_v14 = vpack.i.bf16 %v2405_v12, %v2400_v11  ;;  %v2101_v15 = vpack.i.bf16 %v2400_v11, %v50_v6  ;;  %1862 = vmatprep.mubr.msk.f32.mxu0 %vm68_vm1, %v57_v16  ;;  %v59_v18 = vld [vmem:[%s2721_s0 + $0x20] sm:$0xff]  ;;  %v60_v21 = vld [vmem:[%s2721_s0 + $0x28] sm:$0xff]  ;;  %v61_v22 = vld [vmem:[%s2721_s0 + $0x30] sm:$0xff]  ;;  %v212_v9 = vsub.s32 1, %v2439_v25  ;;  %v1584_v11 = vsub.s32 4, %v2439_v25 }
  0x2b   :  { %1936 = vmatpush3.bf16.msra.mxu1 %v1933_v5  ;;  %2092 = vrot.lane.b32.xlu0 %v2091_v13, %s2304_s17  ;;  %v62_v23 = vld [vmem:[%s2721_s0 + $0x38] sm:$0xff]  ;;  %v2445_v27 = vld [vmem:[%s2725_s4] sm:$0x3f]  ;;  %s2305_s0 = smov 32  }
  0x2c   :  { %1938 = vmatprep.subr.bf16.mxu1 %v1937_v8  ;;  %2102 = vrot.lane.b32.xlu1 %v2101_v15, %s2304_s17  ;;  %v67_v30 = vrot.slane %v2445_v27, %v66_v26  ;;  %v213_v10 = vrot.slane %v2445_v27, %v212_v9  ;;  %v2251_v12 = vld [vmem:[%s2725_s4] sm:$0x3f] }
  0x2d   :  { %1863 = vmatmul.mubr.msk.f32.gmra.mrb[2].mxu0 %vm68_vm1, %v58_v17 }
  0x2e   :  { %1865 = vmatprep.mubr.msk.f32.mxu0 %vm68_vm1, %v59_v18  ;;  %v346_v18 = vsub.s32 2, %v2439_v25 }
  0x2f   :  { %1940 = vmatpush3.bf16.msra.mxu1 %v1937_v8  ;;  %2097 = vrot.lane.b32.xlu0 %v2096_v19, %s2304_s17 }
  0x30   :  { %2107 = vrot.lane.b32.xlu1 %v2106_v20, %s2304_s17  ;;  %v2470_v19 = vrot.slane %v2445_v27, %v346_v18 }
  0x31   :  { %1866 = vmatmul.mubr.msk.f32.gmra.mrb[4].mxu0 %vm68_vm1, %v60_v21 }
  0x32   :  { %1868 = vmatprep.mubr.msk.f32.mxu0 %vm68_vm1, %v61_v22 }
  0x35   :  { %1869 = vmatmul.mubr.msk.f32.gmra.mrb[6].mxu0 %vm68_vm1, %v62_v23 }
  0x9d   :  { %v2093_v28 = vpop.permute.xlu0 %2092 }
  0x9e   :  { %v2103_v29 = vpop.permute.xlu1 %2102  ;;  %v2095_v31 = vunpack.i.h.bf16 %v2093_v28  ;;  %v2094_v32 = vunpack.i.l.bf16 %v2093_v28 }
  0x9f   :  { %v2105_v33 = vunpack.i.h.bf16 %v2103_v29  ;;  %v2104_v34 = vunpack.i.l.bf16 %v2103_v29 }
  0xa0   :  { %v373_v41 = vsel %vm372_vm2, %v2094_v32, %v2095_v31 }
  0xa1   :  { %v2098_v36 = vpop.permute.xlu0 %2097  ;;  %v375_v46 = vsel %vm372_vm2, %v2104_v34, %v2105_v33 }
  0xa2   :  { %v2100_v39 = vunpack.i.h.bf16 %v2098_v36  ;;  %v2099_v40 = vunpack.i.l.bf16 %v2098_v36  ;;  %v2108_v42 = vpop.permute.xlu1 %2107 }
  0xa3   :  { %v2110_v44 = vunpack.i.h.bf16 %v2108_v42  ;;  %v2109_v45 = vunpack.i.l.bf16 %v2108_v42 }
  0xa4   :  { %v2450_v47 = vpack.c.bf16 %v2100_v39, %v2095_v31  ;;  %v374_v48 = vsel %vm372_vm2, %v2099_v40, %v2100_v39 }
  0xa5   :  { %v1941_v50 = vpack.c.bf16 %v374_v48, %v373_v41  ;;  %v2453_v51 = vpack.c.bf16 %v2110_v44, %v2105_v33  ;;  %v376_v52 = vsel %vm372_vm2, %v2109_v45, %v2110_v44  ;;  %v511_v44 = vld [vmem:[#allocation4 + $0x8] sm:$0xff]  ;;  %v513_v45 = vld [vmem:[#allocation4 + $0x18] sm:$0xff] }
  0xa6   :  { %v1945_v54 = vpack.c.bf16 %v376_v52, %v375_v46  ;;  %v510_v46 = vld [vmem:[#allocation4] sm:$0xff]  ;;  %v2482_v48 = vpack.c.bf16 %v513_v45, %v511_v44  ;;  %v517_v52 = vld [vmem:[#allocation4 + $0x38] sm:$0xff] }
  0xa7   :  { %1942 = vmatprep.subr.bf16.mxu0 %v1941_v50  ;;  %v522_v45 = vld [vmem:[#allocation4 + $0x60] sm:$0xff] }
  0xa8   :  { %1944 = vmatpush3.bf16.msra.mxu0 %v1941_v50  ;;  %v515_v50 = vld [vmem:[#allocation4 + $0x28] sm:$0xff]  ;;  %1950 = vmatprep.subr.bf16.mxu1 %v2482_v48 }
  0xa9   :  { %1946 = vmatprep.subr.bf16.mxu0 %v1945_v54 }
  0xac   :  { %1948 = vmatpush3.bf16.msra.mxu0 %v1945_v54 }
  0xad   :  { %1958 = vmatprep.subr.bf16.mxu0 %v2482_v48 }
  0xfb   :  { %v1861_v35 = vpop.f32.mrb[0].mxu0 }
  0xfc   :  { %v169_v37 = vadd.f32 %v1861_v35, %v67_v30  ;;  %v163_v38 = vpop.f32.mrb[1].mxu0 }
  0xfd   :  { %v164_v43 = vadd.f32 %v163_v38, %v67_v30 }
  0xfe   :  { %v203_v53 = vmax.f32 %v169_v37, 0.0 }
  0xff   :  { %v202_v49 = vmax.f32 %v164_v43, 0.0 }
 0x100   :  { %v1864_v55 = vpop.f32.mrb[2].mxu0 }
 0x101   :  { %1879 = vmatprep.mubr.msk.f32.mxu1 %vm214_vm3, %v202_v49  ;;  %v179_v56 = vadd.f32 %v1864_v55, %v67_v30  ;;  %v173_v57 = vpop.f32.mrb[3].mxu0  ;;  %v512_v49 = vld [vmem:[#allocation4 + $0x10] sm:$0xff]  ;;  %v2488_v55 = vpack.c.bf16 %v517_v52, %v515_v50 }
 0x102   :  { %1880 = vmatmul.mubr.msk.f32.vlgmr.msra.gmra.mrb[0].mxu1 %vm214_vm3, %v203_v53  ;;  %v174_v58 = vadd.f32 %v173_v57, %v67_v30  ;;  %v2306_v53 = vmov 0.0   ;;  %v2486_v54 = vpack.c.bf16 %v512_v49, %v510_v46  ;;  %v516_v57 = vld [vmem:[#allocation4 + $0x30] sm:$0xff] }
 0x103   :  { %v205_v59 = vmax.f32 %v179_v56, 0.0  ;;  %v514_v56 = vld [vmem:[#allocation4 + $0x20] sm:$0xff]  ;;  %v524_v46 = vld [vmem:[#allocation4 + $0x70] sm:$0xff] }
 0x104   :  { %v1867_v60 = vpop.f32.mrb[4].mxu0  ;;  %v204_v61 = vmax.f32 %v174_v58, 0.0  ;;  %1952 = vmatpush1.bf16.msra.mxu1 %v2486_v54  ;;  %v2493_v58 = vpack.c.bf16 %v516_v57, %v514_v56  ;;  %v2547_v49 = vpack.c.bf16 %v524_v46, %v522_v45 }
 0x105   :  { %v189_v62 = vadd.f32 %v1867_v60, %v67_v30  ;;  %v183_v63 = vpop.f32.mrb[5].mxu0  ;;  %1954 = vmatprep.subr.bf16.mxu1 %v2488_v55 }
 0x106   :  { %v184_v0 = vadd.f32 %v183_v63, %v67_v30  ;;  %1882 = vmatprep.mubr.msk.f32.mxu1 %vm214_vm3, %v204_v61 }
 0x107   :  { %v207_v1 = vmax.f32 %v189_v62, 0.0  ;;  %1883 = vmatmul.mubr.msk.f32.gmra.mrb[2].mxu1 %vm214_vm3, %v205_v59 }
 0x108   :  { %v206_v2 = vmax.f32 %v184_v0, 0.0  ;;  %v1870_v3 = vpop.f32.mrb[6].mxu0  ;;  %1956 = vmatpush1.bf16.msra.mxu1 %v2493_v58 }
 0x109   :  { %v199_v4 = vadd.f32 %v1870_v3, %v67_v30  ;;  %v193_v5 = vpop.f32.mrb[7].mxu0  ;;  %1974 = vmatprep.subr.bf16.mxu1 %v2482_v48 }
 0x10a   :  { %v194_v6 = vadd.f32 %v193_v5, %v67_v30  ;;  %1885 = vmatprep.mubr.msk.f32.mxu1 %vm214_vm3, %v206_v2  ;;  %v528_v5 = vsub.s32 3, %v2439_v25 }
 0x10b   :  { %v209_v7 = vmax.f32 %v199_v4, 0.0  ;;  %1886 = vmatmul.mubr.msk.f32.gmra.mrb[4].mxu1 %vm214_vm3, %v207_v1 }
 0x10c   :  { %v208_v8 = vmax.f32 %v194_v6, 0.0 }
 0x10e   :  { %1888 = vmatprep.mubr.msk.f32.mxu1 %vm214_vm3, %v208_v8 }
 0x10f   :  { %1889 = vmatmul.mubr.msk.f32.gmra.mrb[6].mxu1 %vm214_vm3, %v209_v7  ;;  %v2525_v7 = vrot.slane %v2445_v27, %v528_v5 }
 0x110   :  { %617 = vmatprep.mubr.f32.mxu1 %v2306_v53 }
 0x1d5   :  { %v1881_v13 = vpop.f32.mrb[0].mxu1 }
 0x1d6   :  { %v305_v15 = vpop.f32.mrb[1].mxu1  ;;  %v311_v17 = vadd.f32 %v1881_v13, %v213_v10 }
 0x1d7   :  { %v306_v16 = vadd.f32 %v305_v15, %v213_v10 }
 0x1d9   :  { %1899 = vmatprep.mubr.msk.f32.mxu0 %vm214_vm3, %v306_v16 }
 0x1da   :  { %1900 = vmatmul.mubr.msk.f32.vlgmr.msra.gmra.mrb[8].mxu0 %vm214_vm3, %v311_v17  ;;  %v1884_v24 = vpop.f32.mrb[2].mxu1 }
 0x1db   :  { %v321_v26 = vadd.f32 %v1884_v24, %v213_v10  ;;  %v315_v28 = vpop.f32.mrb[3].mxu1  ;;  %1960 = vmatpush1.bf16.msra.mxu0 %v2486_v54 }
 0x1dc   :  { %v316_v29 = vadd.f32 %v315_v28, %v213_v10  ;;  %1962 = vmatprep.subr.bf16.mxu0 %v2488_v55 }
 0x1de   :  { %v1887_v30 = vpop.f32.mrb[4].mxu1  ;;  %1902 = vmatprep.mubr.msk.f32.mxu0 %vm214_vm3, %v316_v29 }
 0x1df   :  { %v325_v31 = vpop.f32.mrb[5].mxu1  ;;  %v331_v34 = vadd.f32 %v1887_v30, %v213_v10  ;;  %1903 = vmatmul.mubr.msk.f32.gmra.mrb[10].mxu0 %vm214_vm3, %v321_v26 }
 0x1e0   :  { %v326_v32 = vadd.f32 %v325_v31, %v213_v10  ;;  %1964 = vmatpush1.bf16.msra.mxu0 %v2493_v58 }
 0x1e2   :  { %v1890_v33 = vpop.f32.mrb[6].mxu1  ;;  %1905 = vmatprep.mubr.msk.f32.mxu0 %vm214_vm3, %v326_v32 }
 0x1e3   :  { %v335_v35 = vpop.f32.mrb[7].mxu1  ;;  %v341_v37 = vadd.f32 %v1890_v33, %v213_v10  ;;  %1906 = vmatmul.mubr.msk.f32.gmra.mrb[12].mxu0 %vm214_vm3, %v331_v34 }
 0x1e4   :  { %v336_v36 = vadd.f32 %v335_v35, %v213_v10 }
 0x1e6   :  { %1908 = vmatprep.mubr.msk.f32.mxu0 %vm214_vm3, %v336_v36  ;;  %v519_v36 = vld [vmem:[#allocation4 + $0x48] sm:$0xff] }
 0x1e7   :  { %1909 = vmatmul.mubr.msk.f32.gmra.mrb[14].mxu0 %vm214_vm3, %v341_v37  ;;  %v521_v37 = vld [vmem:[#allocation4 + $0x58] sm:$0xff] }
 0x1e8   :  { %749 = vmatprep.mubr.f32.mxu0 %v2306_v53 }
 0x2ad   :  { %v2472_v20 = vpop.f32.mrb[8].mxu0 }
 0x2ae   :  { %v471_v21 = vpop.f32.mrb[9].mxu0  ;;  %v477_v6 = vadd.f32 %v2472_v20, %v2470_v19 }
 0x2af   :  { %v472_v22 = vadd.f32 %v471_v21, %v2470_v19 }
 0x2b1   :  { %2121 = vtanh.f32 %v472_v22  ;;  %v1788_v38 = vmul.f32 -1.442695, %v472_v22 }
 0x2b2   :  { %v2502_v60 = vpop.f32.mrb[10].mxu0 }
 0x2b3   :  { %2123 = vpow2.f32 %v1788_v38  ;;  %v2504_v61 = vpop.f32.mrb[11].mxu0  ;;  %v518_v38 = vld [vmem:[#allocation4 + $0x40] sm:$0xff] }
 0x2b4   :  { %v482_v5 = vadd.f32 %v2504_v61, %v2470_v19 }
 0x2b6   :  { %v2506_v62 = vpop.f32.mrb[12].mxu0 }
 0x2b7   :  { %v2508_v63 = vpop.f32.mrb[13].mxu0 }
 0x2ba   :  { %v2510_v0 = vpop.f32.mrb[14].mxu0 }
 0x2bb   :  { %v2122_v23 = vpop.eup %2121  ;;  %v2512_v1 = vpop.f32.mrb[15].mxu0 }
 0x2bc   :  { %538 = vrot.lane.b32.xlu0 %v2122_v23, %s2305_s0 }
 0x2bd   :  { %v2124_v39 = vpop.eup %2123 }
 0x2be   :  { %v533_v40 = vadd.f32 1.0, %v2124_v39  ;;  %v2538_v39 = vpack.c.bf16 %v521_v37, %v519_v36 }
 0x2c0   :  { %2125 = vrcp.f32 %v533_v40  ;;  %v520_v40 = vld [vmem:[#allocation4 + $0x50] sm:$0xff]  ;;  %1966 = vmatprep.subr.bf16.mxu0 %v2538_v39 }
 0x2ca   :  { %v2126_v41 = vpop.eup %2125 }
 0x32e   :  { %v539_v42 = vpop.permute.xlu0 %538 }
 0x32f   :  { %v541_v43 = vmul.f32 %v2126_v41, %v539_v42  ;;  %v525_v42 = vld [vmem:[#allocation4 + $0x78] sm:$0xff] }
 0x331   :  { %2127 = vtanh.f32 %v541_v43 }
 0x33b   :  { %v2128_v59 = vpop.eup %2127 }
 0x33c   :  { %544 = vrot.lane.b32.xlu1 %v2128_v59, %s2307_s25 }
 0x3ae   :  { %v545_v2 = vpop.permute.xlu1 %544 }
 0x3af   :  { %v547_v3 = vmul.f32 %v2126_v41, %v545_v2  ;;  %v523_v41 = vld [vmem:[#allocation4 + $0x68] sm:$0xff] }
 0x3b0   :  { %v2542_v44 = vpack.c.bf16 %v525_v42, %v523_v41 }
 0x3b1   :  { %549 = vrot.lane.b32.xlu0 %v547_v3, %s2307_s25 }
 0x3b5   :  { %652 = vrot.lane.b32.xlu0 %v541_v43, %s2305_s0  ;;  %v2540_v43 = vpack.c.bf16 %v520_v40, %v518_v38 }
 0x3b7   :  { %1968 = vmatpush1.bf16.msra.mxu0 %v2540_v43 }
 0x3b8   :  { %1970 = vmatprep.subr.bf16.mxu0 %v2542_v44 }
 0x3bb   :  { %1972 = vmatpush1.bf16.msra.mxu0 %v2547_v49 }
 0x3bc   :  { %1990 = vmatprep.subr.bf16.mxu0 %v2482_v48 }
 0x423   :  { %v550_v4 = vpop.permute.xlu0 %549 }
 0x424   :  { %1789 = vmatmul.mubr.msk.f32.vlgmr.msra.gmra.mrb[8].mxu1 %vm214_vm3, %v550_v4 }
 0x425   :  { %1976 = vmatpush1.bf16.msra.mxu1 %v2486_v54  ;;  %886 = vmatprep.mubr.f32.mxu1 %v2306_v53 }
 0x426   :  { %1978 = vmatprep.subr.bf16.mxu1 %v2488_v55 }
 0x427   :  { %v653_v32 = vpop.permute.xlu0 %652 }
 0x429   :  { %1980 = vmatpush1.bf16.msra.mxu1 %v2493_v58 }
 0x42a   :  { %1982 = vmatprep.subr.bf16.mxu1 %v2538_v39 }
 0x42d   :  { %1984 = vmatpush1.bf16.msra.mxu1 %v2540_v43 }
 0x42e   :  { %1986 = vmatprep.subr.bf16.mxu1 %v2542_v44 }
 0x431   :  { %1988 = vmatpush1.bf16.msra.mxu1 %v2547_v49 }
 0x432   :  { %2006 = vmatprep.subr.bf16.mxu1 %v2482_v48 }
 0x4f7   :  { %v619_v8 = vpop.f32.mrb[8].mxu1 }
 0x4f8   :  { %v643_v9 = vadd.f32 %v619_v8, %v477_v6  ;;  %v621_v10 = vpop.f32.mrb[9].mxu1 }
 0x4f9   :  { %v624_v13 = vadd.f32 %v621_v10, %v2525_v7 }
 0x4fa   :  { %2129 = vtanh.f32 %v643_v9  ;;  %v1791_v17 = vmul.f32 -1.442695, %v643_v9 }
 0x4fb   :  { %2131 = vtanh.f32 %v624_v13  ;;  %v1790_v18 = vmul.f32 -1.442695, %v624_v13 }
 0x4fc   :  { %2133 = vpow2.f32 %v1791_v17 }
 0x4fd   :  { %2135 = vpow2.f32 %v1790_v18 }
 0x504   :  { %v2130_v15 = vpop.eup %2129 }
 0x505   :  { %657 = vrot.lane.b32.xlu1 %v2130_v15, %s2305_s0  ;;  %v2132_v16 = vpop.eup %2131 }
 0x506   :  { %v2134_v20 = vpop.eup %2133 }
 0x507   :  { %v647_v27 = vadd.f32 1.0, %v2134_v20  ;;  %v2136_v21 = vpop.eup %2135 }
 0x508   :  { %v628_v22 = vadd.f32 1.0, %v2136_v21 }
 0x509   :  { %633 = vrot.lane.b32.xlu1 %v2132_v16, %s2305_s0  ;;  %2137 = vrcp.f32 %v647_v27 }
 0x50a   :  { %2139 = vrcp.f32 %v628_v22 }
 0x513   :  { %v2138_v23 = vpop.eup %2137 }
 0x514   :  { %v2140_v28 = vpop.eup %2139  ;;  %v655_v33 = vmul.f32 %v2138_v23, %v653_v32 }
 0x577   :  { %v658_v24 = vpop.permute.xlu1 %657 }
 0x578   :  { %v660_v26 = vmul.f32 %v2138_v23, %v658_v24 }
 0x57a   :  { %662 = vrot.lane.b32.xlu0 %v660_v26, %s2305_s0 }
 0x57b   :  { %v634_v29 = vpop.permute.xlu1 %633 }
 0x57c   :  { %v2531_v30 = vmul.f32 %v2140_v28, %v634_v29 }
 0x57e   :  { %2141 = vtanh.f32 %v2531_v30 }
 0x588   :  { %v2142_v31 = vpop.eup %2141 }
 0x589   :  { %639 = vrot.lane.b32.xlu1 %v2142_v31, %s2307_s25 }
 0x5ec   :  { %v663_v34 = vpop.permute.xlu0 %662 }
 0x5ed   :  { %v2535_v35 = vadd.f32 %v663_v34, %v655_v33 }
 0x5ef   :  { %2143 = vtanh.f32 %v2535_v35 }
 0x5f9   :  { %v2144_v50 = vpop.eup %2143 }
 0x5fa   :  { %668 = vrot.lane.b32.xlu0 %v2144_v50, %s2305_s0 }
 0x5fb   :  { %v640_v52 = vpop.permute.xlu1 %639 }
 0x5fc   :  { %v642_v56 = vmul.f32 %v2140_v28, %v640_v52  ;;  %v487_v52 = vadd.f32 %v2502_v60, %v2470_v19 }
 0x5fe   :  { %677 = vrot.lane.b32.xlu0 %v642_v56, %s2304_s17 }
 0x66c   :  { %v669_v57 = vpop.permute.xlu0 %668 }
 0x66d   :  { %v671_v59 = vmul.f32 %v2138_v23, %v669_v57 }
 0x66f   :  { %673 = vrot.lane.b32.xlu1 %v671_v59, %s2307_s25 }
 0x670   :  { %v678_v2 = vpop.permute.xlu0 %677 }
 0x6e1   :  { %v674_v3 = vpop.permute.xlu1 %673 }
 0x6e2   :  { %v680_v4 = vsel %vm214_vm3, %v674_v3, %v678_v2 }
 0x6e3   :  { %1792 = vmatmul.mubr.msk.f32.vlgmr.msra.gmra.mrb[16].mxu0 %vm681_vm4, %v680_v4 }
 0x6e4   :  { %1992 = vmatpush1.bf16.msra.mxu0 %v2486_v54  ;;  %1019 = vmatprep.mubr.f32.mxu0 %v2306_v53 }
 0x6e5   :  { %1994 = vmatprep.subr.bf16.mxu0 %v2488_v55 }
 0x6e8   :  { %1996 = vmatpush1.bf16.msra.mxu0 %v2493_v58 }
 0x6e9   :  { %1998 = vmatprep.subr.bf16.mxu0 %v2538_v39 }
 0x6ec   :  { %2000 = vmatpush1.bf16.msra.mxu0 %v2540_v43 }
 0x6ed   :  { %2002 = vmatprep.subr.bf16.mxu0 %v2542_v44 }
 0x6f0   :  { %2004 = vmatpush1.bf16.msra.mxu0 %v2547_v49 }
 0x6f1   :  { %2022 = vmatprep.subr.bf16.mxu0 %v2482_v48 }
 0x7b6   :  { %v751_v6 = vpop.f32.mrb[16].mxu0 }
 0x7b7   :  { %v785_v8 = vadd.f32 %v751_v6, %v482_v5  ;;  %v753_v9 = vpop.f32.mrb[17].mxu0 }
 0x7b8   :  { %v756_v10 = vadd.f32 %v753_v9, %v2525_v7 }
 0x7b9   :  { %2145 = vtanh.f32 %v785_v8  ;;  %v1794_v16 = vmul.f32 -1.442695, %v785_v8 }
 0x7ba   :  { %2147 = vtanh.f32 %v756_v10  ;;  %v1793_v17 = vmul.f32 -1.442695, %v756_v10 }
 0x7bb   :  { %2149 = vpow2.f32 %v1794_v16 }
 0x7bc   :  { %2151 = vpow2.f32 %v1793_v17 }
 0x7c3   :  { %v2146_v13 = vpop.eup %2145 }
 0x7c4   :  { %v2148_v15 = vpop.eup %2147  ;;  %795 = vrot.lane.b32.xlu0 %v2146_v13, %s2305_s0 }
 0x7c5   :  { %770 = vrot.lane.b32.xlu1 %v2148_v15, %s2305_s0  ;;  %v2150_v61 = vpop.eup %2149 }
 0x7c6   :  { %v2152_v18 = vpop.eup %2151  ;;  %v789_v20 = vadd.f32 1.0, %v2150_v61 }
 0x7c7   :  { %v760_v27 = vadd.f32 1.0, %v2152_v18 }
 0x7c8   :  { %2153 = vrcp.f32 %v789_v20 }
 0x7c9   :  { %765 = vrot.lane.b32.xlu1 %v2531_v30, %s2305_s0  ;;  %2155 = vrcp.f32 %v760_v27 }
 0x7d2   :  { %v2154_v21 = vpop.eup %2153 }
 0x7d3   :  { %v2156_v23 = vpop.eup %2155  ;;  %v793_v30 = vmul.f32 %v2154_v21, %v2535_v35 }
 0x836   :  { %v796_v22 = vpop.permute.xlu0 %795 }
 0x837   :  { %v798_v24 = vmul.f32 %v2154_v21, %v796_v22  ;;  %v771_v26 = vpop.permute.xlu1 %770 }
 0x838   :  { %v773_v28 = vmul.f32 %v2156_v23, %v771_v26 }
 0x839   :  { %800 = vrot.lane.b32.xlu1 %v798_v24, %s2305_s0 }
 0x83a   :  { %775 = vrot.lane.b32.xlu0 %v773_v28, %s2305_s0 }
 0x83b   :  { %v766_v29 = vpop.permute.xlu1 %765 }
 0x83c   :  { %v768_v31 = vmul.f32 %v2156_v23, %v766_v29 }
 0x8ab   :  { %v801_v32 = vpop.permute.xlu1 %800 }
 0x8ac   :  { %v803_v33 = vadd.f32 %v801_v32, %v793_v30  ;;  %v776_v34 = vpop.permute.xlu0 %775 }
 0x8ad   :  { %v778_v36 = vadd.f32 %v776_v34, %v768_v31 }
 0x8ae   :  { %2157 = vtanh.f32 %v803_v33 }
 0x8af   :  { %2159 = vtanh.f32 %v778_v36 }
 0x8b8   :  { %v2158_v37 = vpop.eup %2157 }
 0x8b9   :  { %v2160_v38 = vpop.eup %2159  ;;  %806 = vrot.lane.b32.xlu1 %v2158_v37, %s2305_s0  ;;  %v492_v37 = vadd.f32 %v2508_v63, %v2470_v19 }
 0x8ba   :  { %781 = vrot.lane.b32.xlu0 %v2160_v38, %s2305_s0 }
 0x92b   :  { %v807_v40 = vpop.permute.xlu1 %806 }
 0x92c   :  { %v809_v41 = vmul.f32 %v2154_v21, %v807_v40  ;;  %v782_v42 = vpop.permute.xlu0 %781 }
 0x92d   :  { %v784_v45 = vmul.f32 %v2156_v23, %v782_v42 }
 0x92e   :  { %811 = vrot.lane.b32.xlu0 %v809_v41, %s2307_s25 }
 0x92f   :  { %815 = vrot.lane.b32.xlu1 %v784_v45, %s2304_s17 }
 0x9a0   :  { %v812_v35 = vpop.permute.xlu0 %811 }
 0x9a1   :  { %v816_v46 = vpop.permute.xlu1 %815 }
 0x9a2   :  { %v818_v50 = vsel %vm214_vm3, %v812_v35, %v816_v46 }
 0x9a3   :  { %1795 = vmatmul.mubr.msk.f32.vlgmr.msra.gmra.mrb[10].mxu1 %vm681_vm4, %v818_v50 }
 0x9a4   :  { %2008 = vmatpush1.bf16.msra.mxu1 %v2486_v54  ;;  %1152 = vmatprep.mubr.f32.mxu1 %v2306_v53 }
 0x9a5   :  { %2010 = vmatprep.subr.bf16.mxu1 %v2488_v55 }
 0x9a8   :  { %2012 = vmatpush1.bf16.msra.mxu1 %v2493_v58 }
 0x9a9   :  { %2014 = vmatprep.subr.bf16.mxu1 %v2538_v39 }
 0x9ac   :  { %2016 = vmatpush1.bf16.msra.mxu1 %v2540_v43 }
 0x9ad   :  { %2018 = vmatprep.subr.bf16.mxu1 %v2542_v44 }
 0x9b0   :  { %2020 = vmatpush1.bf16.msra.mxu1 %v2547_v49 }
 0x9b1   :  { %2038 = vmatprep.subr.bf16.mxu1 %v2482_v48 }
 0xa76   :  { %v888_v56 = vpop.f32.mrb[10].mxu1 }
 0xa77   :  { %v918_v57 = vadd.f32 %v888_v56, %v487_v52  ;;  %v890_v59 = vpop.f32.mrb[11].mxu1 }
 0xa78   :  { %v893_v2 = vadd.f32 %v890_v59, %v2525_v7 }
 0xa79   :  { %2161 = vtanh.f32 %v918_v57  ;;  %v1797_v5 = vmul.f32 -1.442695, %v918_v57 }
 0xa7a   :  { %2163 = vtanh.f32 %v893_v2  ;;  %v1796_v6 = vmul.f32 -1.442695, %v893_v2 }
 0xa7b   :  { %2165 = vpow2.f32 %v1797_v5 }
 0xa7c   :  { %2167 = vpow2.f32 %v1796_v6 }
 0xa83   :  { %v2162_v3 = vpop.eup %2161 }
 0xa84   :  { %v2164_v4 = vpop.eup %2163  ;;  %928 = vrot.lane.b32.xlu1 %v2162_v3, %s2305_s0 }
 0xa85   :  { %903 = vrot.lane.b32.xlu0 %v2164_v4, %s2305_s0  ;;  %v2166_v8 = vpop.eup %2165 }
 0xa86   :  { %v2168_v9 = vpop.eup %2167  ;;  %v922_v60 = vadd.f32 1.0, %v2166_v8 }
 0xa87   :  { %v897_v10 = vadd.f32 1.0, %v2168_v9 }
 0xa88   :  { %2169 = vrcp.f32 %v922_v60 }
 0xa89   :  { %2171 = vrcp.f32 %v897_v10 }
 0xa92   :  { %v2170_v13 = vpop.eup %2169 }
 0xa93   :  { %v2172_v16 = vpop.eup %2171  ;;  %v926_v20 = vmul.f32 %v2170_v13, %v803_v33 }
 0xa94   :  { %v901_v21 = vmul.f32 %v2172_v16, %v778_v36 }
 0xaf6   :  { %v929_v15 = vpop.permute.xlu1 %928 }
 0xaf7   :  { %v931_v17 = vmul.f32 %v2170_v13, %v929_v15  ;;  %v904_v61 = vpop.permute.xlu0 %903 }
 0xaf8   :  { %v906_v18 = vmul.f32 %v2172_v16, %v904_v61 }
 0xaf9   :  { %933 = vrot.lane.b32.xlu1 %v931_v17, %s2305_s0 }
 0xafa   :  { %908 = vrot.lane.b32.xlu0 %v906_v18, %s2305_s0 }
 0xb6b   :  { %v934_v27 = vpop.permute.xlu1 %933 }
 0xb6c   :  { %v936_v22 = vadd.f32 %v934_v27, %v926_v20  ;;  %v909_v23 = vpop.permute.xlu0 %908 }
 0xb6d   :  { %v911_v24 = vadd.f32 %v909_v23, %v901_v21  ;;  %v497_v23 = vadd.f32 %v2506_v62, %v2470_v19 }
 0xb6e   :  { %2173 = vtanh.f32 %v936_v22 }
 0xb6f   :  { %2175 = vtanh.f32 %v911_v24 }
 0xb78   :  { %v2174_v26 = vpop.eup %2173 }
 0xb79   :  { %v2176_v28 = vpop.eup %2175  ;;  %939 = vrot.lane.b32.xlu1 %v2174_v26, %s2305_s0 }
 0xb7a   :  { %914 = vrot.lane.b32.xlu0 %v2176_v28, %s2305_s0 }
 0xbeb   :  { %v940_v29 = vpop.permute.xlu1 %939 }
 0xbec   :  { %v942_v30 = vmul.f32 %v2170_v13, %v940_v29  ;;  %v915_v31 = vpop.permute.xlu0 %914 }
 0xbed   :  { %v917_v32 = vmul.f32 %v2172_v16, %v915_v31 }
 0xbee   :  { %944 = vrot.lane.b32.xlu0 %v942_v30, %s2307_s25 }
 0xbef   :  { %948 = vrot.lane.b32.xlu1 %v917_v32, %s2304_s17 }
 0xc60   :  { %v945_v33 = vpop.permute.xlu0 %944 }
 0xc61   :  { %v949_v34 = vpop.permute.xlu1 %948 }
 0xc62   :  { %v951_v36 = vsel %vm214_vm3, %v945_v33, %v949_v34 }
 0xc63   :  { %1798 = vmatmul.mubr.msk.f32.vlgmr.msra.gmra.mrb[18].mxu0 %vm681_vm4, %v951_v36 }
 0xc64   :  { %2024 = vmatpush1.bf16.msra.mxu0 %v2486_v54  ;;  %1285 = vmatprep.mubr.f32.mxu0 %v2306_v53 }
 0xc65   :  { %2026 = vmatprep.subr.bf16.mxu0 %v2488_v55 }
 0xc68   :  { %2028 = vmatpush1.bf16.msra.mxu0 %v2493_v58 }
 0xc69   :  { %2030 = vmatprep.subr.bf16.mxu0 %v2538_v39 }
 0xc6c   :  { %2032 = vmatpush1.bf16.msra.mxu0 %v2540_v43 }
 0xc6d   :  { %2034 = vmatprep.subr.bf16.mxu0 %v2542_v44 }
 0xc70   :  { %2036 = vmatpush1.bf16.msra.mxu0 %v2547_v49 }
 0xc71   :  { %2054 = vmatprep.subr.bf16.mxu0 %v2482_v48 }
 0xd36   :  { %v1021_v38 = vpop.f32.mrb[18].mxu0 }
 0xd37   :  { %v1051_v40 = vadd.f32 %v1021_v38, %v492_v37  ;;  %v1023_v41 = vpop.f32.mrb[19].mxu0 }
 0xd38   :  { %v1026_v42 = vadd.f32 %v1023_v41, %v2525_v7 }
 0xd39   :  { %2177 = vtanh.f32 %v1051_v40  ;;  %v1800_v46 = vmul.f32 -1.442695, %v1051_v40 }
 0xd3a   :  { %2179 = vtanh.f32 %v1026_v42  ;;  %v1799_v50 = vmul.f32 -1.442695, %v1026_v42 }
 0xd3b   :  { %2181 = vpow2.f32 %v1800_v46 }
 0xd3c   :  { %2183 = vpow2.f32 %v1799_v50 }
 0xd43   :  { %v2178_v45 = vpop.eup %2177 }
 0xd44   :  { %v2180_v35 = vpop.eup %2179  ;;  %1061 = vrot.lane.b32.xlu1 %v2178_v45, %s2305_s0 }
 0xd45   :  { %1036 = vrot.lane.b32.xlu0 %v2180_v35, %s2305_s0  ;;  %v2182_v48 = vpop.eup %2181 }
 0xd46   :  { %v2184_v52 = vpop.eup %2183  ;;  %v1055_v63 = vadd.f32 1.0, %v2182_v48 }
 0xd47   :  { %v1030_v56 = vadd.f32 1.0, %v2184_v52 }
 0xd48   :  { %2185 = vrcp.f32 %v1055_v63 }
 0xd49   :  { %2187 = vrcp.f32 %v1030_v56 }
 0xd52   :  { %v2186_v57 = vpop.eup %2185 }
 0xd53   :  { %v2188_v2 = vpop.eup %2187  ;;  %v1059_v6 = vmul.f32 %v2186_v57, %v936_v22 }
 0xd54   :  { %v1034_v9 = vmul.f32 %v2188_v2, %v911_v24 }
 0xdb6   :  { %v1062_v59 = vpop.permute.xlu1 %1061 }
 0xdb7   :  { %v1064_v3 = vmul.f32 %v2186_v57, %v1062_v59  ;;  %v1037_v4 = vpop.permute.xlu0 %1036 }
 0xdb8   :  { %v1039_v5 = vmul.f32 %v2188_v2, %v1037_v4 }
 0xdb9   :  { %1066 = vrot.lane.b32.xlu1 %v1064_v3, %s2305_s0 }
 0xdba   :  { %1041 = vrot.lane.b32.xlu0 %v1039_v5, %s2305_s0 }
 0xe2b   :  { %v1067_v8 = vpop.permute.xlu1 %1066 }
 0xe2c   :  { %v1069_v60 = vadd.f32 %v1067_v8, %v1059_v6  ;;  %v1042_v10 = vpop.permute.xlu0 %1041 }
 0xe2d   :  { %v1044_v13 = vadd.f32 %v1042_v10, %v1034_v9 }
 0xe2e   :  { %2189 = vtanh.f32 %v1069_v60 }
 0xe2f   :  { %2191 = vtanh.f32 %v1044_v13 }
 0xe38   :  { %v2190_v15 = vpop.eup %2189 }
 0xe39   :  { %v2192_v16 = vpop.eup %2191  ;;  %1072 = vrot.lane.b32.xlu1 %v2190_v15, %s2305_s0 }
 0xe3a   :  { %1047 = vrot.lane.b32.xlu0 %v2192_v16, %s2305_s0 }
 0xeab   :  { %v1073_v17 = vpop.permute.xlu1 %1072 }
 0xeac   :  { %v1075_v61 = vmul.f32 %v2186_v57, %v1073_v17  ;;  %v1048_v18 = vpop.permute.xlu0 %1047 }
 0xead   :  { %v1050_v20 = vmul.f32 %v2188_v2, %v1048_v18 }
 0xeae   :  { %1077 = vrot.lane.b32.xlu0 %v1075_v61, %s2307_s25 }
 0xeaf   :  { %1081 = vrot.lane.b32.xlu1 %v1050_v20, %s2304_s17 }
 0xf20   :  { %v1078_v27 = vpop.permute.xlu0 %1077 }
 0xf21   :  { %v1082_v21 = vpop.permute.xlu1 %1081 }
 0xf22   :  { %v1084_v22 = vsel %vm214_vm3, %v1078_v27, %v1082_v21 }
 0xf23   :  { %1801 = vmatmul.mubr.msk.f32.vlgmr.msra.gmra.mrb[12].mxu1 %vm681_vm4, %v1084_v22 }
 0xf24   :  { %2040 = vmatpush1.bf16.msra.mxu1 %v2486_v54  ;;  %1418 = vmatprep.mubr.f32.mxu1 %v2306_v53 }
 0xf25   :  { %2042 = vmatprep.subr.bf16.mxu1 %v2488_v55 }
 0xf28   :  { %2044 = vmatpush1.bf16.msra.mxu1 %v2493_v58 }
 0xf29   :  { %2046 = vmatprep.subr.bf16.mxu1 %v2538_v39 }
 0xf2c   :  { %2048 = vmatpush1.bf16.msra.mxu1 %v2540_v43 }
 0xf2d   :  { %2050 = vmatprep.subr.bf16.mxu1 %v2542_v44 }
 0xf30   :  { %2052 = vmatpush1.bf16.msra.mxu1 %v2547_v49 }
 0xff6   :  { %v1154_v24 = vpop.f32.mrb[12].mxu1 }
 0xff7   :  { %v1184_v26 = vadd.f32 %v1154_v24, %v497_v23  ;;  %v1156_v28 = vpop.f32.mrb[13].mxu1 }
 0xff8   :  { %v1159_v29 = vadd.f32 %v1156_v28, %v2525_v7 }
 0xff9   :  { %2193 = vtanh.f32 %v1184_v26  ;;  %v1803_v32 = vmul.f32 -1.442695, %v1184_v26 }
 0xffa   :  { %2195 = vtanh.f32 %v1159_v29  ;;  %v1802_v33 = vmul.f32 -1.442695, %v1159_v29 }
 0xffb   :  { %2197 = vpow2.f32 %v1803_v32  ;;  %v2308_v32 = vmov 0.0|0.0  }
 0xffc   :  { %2199 = vpow2.f32 %v1802_v33  ;;  %2069 = vmatprep.subr.bf16.mxu1 %v2308_v32 }
0x1003   :  { %v2194_v30 = vpop.eup %2193 }
0x1004   :  { %v2196_v31 = vpop.eup %2195  ;;  %1194 = vrot.lane.b32.xlu1 %v2194_v30, %s2305_s0 }
0x1005   :  { %1169 = vrot.lane.b32.xlu0 %v2196_v31, %s2305_s0  ;;  %v2198_v34 = vpop.eup %2197 }
0x1006   :  { %v2200_v36 = vpop.eup %2199  ;;  %v1188_v62 = vadd.f32 1.0, %v2198_v34 }
0x1007   :  { %v1163_v37 = vadd.f32 1.0, %v2200_v36 }
0x1008   :  { %2201 = vrcp.f32 %v1188_v62 }
0x1009   :  { %2203 = vrcp.f32 %v1163_v37 }
0x1012   :  { %v2202_v38 = vpop.eup %2201 }
0x1013   :  { %v2204_v41 = vpop.eup %2203  ;;  %v1192_v46 = vmul.f32 %v2202_v38, %v1069_v60  ;;  %v502_v60 = vadd.f32 %v2512_v1, %v2470_v19 }
0x1014   :  { %v1167_v48 = vmul.f32 %v2204_v41, %v1044_v13 }
0x1076   :  { %v1195_v40 = vpop.permute.xlu1 %1194 }
0x1077   :  { %v1197_v42 = vmul.f32 %v2202_v38, %v1195_v40  ;;  %v1170_v45 = vpop.permute.xlu0 %1169 }
0x1078   :  { %v1172_v35 = vmul.f32 %v2204_v41, %v1170_v45 }
0x1079   :  { %1199 = vrot.lane.b32.xlu1 %v1197_v42, %s2305_s0 }
0x107a   :  { %1174 = vrot.lane.b32.xlu0 %v1172_v35, %s2305_s0 }
0x10eb   :  { %v1200_v50 = vpop.permute.xlu1 %1199 }
0x10ec   :  { %v1202_v52 = vadd.f32 %v1200_v50, %v1192_v46  ;;  %v1175_v63 = vpop.permute.xlu0 %1174 }
0x10ed   :  { %v1177_v56 = vadd.f32 %v1175_v63, %v1167_v48 }
0x10ee   :  { %2205 = vtanh.f32 %v1202_v52 }
0x10ef   :  { %2207 = vtanh.f32 %v1177_v56 }
0x10f8   :  { %v2206_v57 = vpop.eup %2205 }
0x10f9   :  { %v2208_v59 = vpop.eup %2207  ;;  %1205 = vrot.lane.b32.xlu1 %v2206_v57, %s2305_s0 }
0x10fa   :  { %1180 = vrot.lane.b32.xlu0 %v2208_v59, %s2305_s0 }
0x116b   :  { %v1206_v2 = vpop.permute.xlu1 %1205 }
0x116c   :  { %v1208_v3 = vmul.f32 %v2202_v38, %v1206_v2  ;;  %v1181_v4 = vpop.permute.xlu0 %1180 }
0x116d   :  { %v1183_v5 = vmul.f32 %v2204_v41, %v1181_v4  ;;  %v507_v41 = vadd.f32 %v2510_v0, %v2470_v19 }
0x116e   :  { %1210 = vrot.lane.b32.xlu0 %v1208_v3, %s2307_s25 }
0x116f   :  { %1214 = vrot.lane.b32.xlu1 %v1183_v5, %s2304_s17 }
0x11e0   :  { %v1211_v6 = vpop.permute.xlu0 %1210 }
0x11e1   :  { %v1215_v8 = vpop.permute.xlu1 %1214 }
0x11e2   :  { %v1217_v9 = vsel %vm214_vm3, %v1211_v6, %v1215_v8 }
0x11e3   :  { %1804 = vmatmul.mubr.msk.f32.vlgmr.msra.gmra.mrb[20].mxu0 %vm681_vm4, %v1217_v9 }
0x11e4   :  { %2056 = vmatpush1.bf16.msra.mxu0 %v2486_v54  ;;  %1551 = vmatprep.mubr.f32.mxu0 %v2306_v53 }
0x11e5   :  { %2058 = vmatprep.subr.bf16.mxu0 %v2488_v55 }
0x11e8   :  { %2060 = vmatpush1.bf16.msra.mxu0 %v2493_v58 }
0x11e9   :  { %2062 = vmatprep.subr.bf16.mxu0 %v2538_v39 }
0x11ec   :  { %2064 = vmatpush1.bf16.msra.mxu0 %v2540_v43 }
0x11ed   :  { %2066 = vmatprep.subr.bf16.mxu0 %v2542_v44 }
0x11f0   :  { %2068 = vmatpush1.bf16.msra.mxu0 %v2547_v49 }
0x12b6   :  { %v1287_v10 = vpop.f32.mrb[20].mxu0 }
0x12b7   :  { %v1317_v13 = vadd.f32 %v1287_v10, %v502_v60  ;;  %v1289_v54 = vpop.f32.mrb[21].mxu0 }
0x12b8   :  { %v1292_v15 = vadd.f32 %v1289_v54, %v2525_v7 }
0x12b9   :  { %2209 = vtanh.f32 %v1317_v13  ;;  %v1806_v39 = vmul.f32 -1.442695, %v1317_v13 }
0x12ba   :  { %2211 = vtanh.f32 %v1292_v15  ;;  %v1805_v43 = vmul.f32 -1.442695, %v1292_v15 }
0x12bb   :  { %2213 = vpow2.f32 %v1806_v39 }
0x12bc   :  { %2215 = vpow2.f32 %v1805_v43 }
0x12c3   :  { %v2210_v55 = vpop.eup %2209 }
0x12c4   :  { %v2212_v58 = vpop.eup %2211  ;;  %1327 = vrot.lane.b32.xlu1 %v2210_v55, %s2305_s0 }
0x12c5   :  { %1302 = vrot.lane.b32.xlu0 %v2212_v58, %s2305_s0  ;;  %v2214_v44 = vpop.eup %2213 }
0x12c6   :  { %v2216_v49 = vpop.eup %2215  ;;  %v1321_v1 = vadd.f32 1.0, %v2214_v44 }
0x12c7   :  { %v1296_v16 = vadd.f32 1.0, %v2216_v49 }
0x12c8   :  { %2217 = vrcp.f32 %v1321_v1 }
0x12c9   :  { %2219 = vrcp.f32 %v1296_v16 }
0x12d2   :  { %v2218_v17 = vpop.eup %2217 }
0x12d3   :  { %v2220_v18 = vpop.eup %2219  ;;  %v1325_v22 = vmul.f32 %v2218_v17, %v1202_v52 }
0x12d4   :  { %v1300_v24 = vmul.f32 %v2220_v18, %v1177_v56 }
0x1336   :  { %v1328_v61 = vpop.permute.xlu1 %1327 }
0x1337   :  { %v1330_v20 = vmul.f32 %v2218_v17, %v1328_v61  ;;  %v1303_v27 = vpop.permute.xlu0 %1302 }
0x1338   :  { %v1305_v21 = vmul.f32 %v2220_v18, %v1303_v27 }
0x1339   :  { %1332 = vrot.lane.b32.xlu1 %v1330_v20, %s2305_s0 }
0x133a   :  { %1307 = vrot.lane.b32.xlu0 %v1305_v21, %s2305_s0 }
0x13ab   :  { %v1333_v23 = vpop.permute.xlu1 %1332 }
0x13ac   :  { %v1335_v26 = vadd.f32 %v1333_v23, %v1325_v22  ;;  %v1308_v28 = vpop.permute.xlu0 %1307 }
0x13ad   :  { %v1310_v29 = vadd.f32 %v1308_v28, %v1300_v24 }
0x13ae   :  { %2221 = vtanh.f32 %v1335_v26 }
0x13af   :  { %2223 = vtanh.f32 %v1310_v29 }
0x13b8   :  { %v2222_v30 = vpop.eup %2221 }
0x13b9   :  { %v2224_v31 = vpop.eup %2223  ;;  %1338 = vrot.lane.b32.xlu1 %v2222_v30, %s2305_s0  ;;  %v2250_v30 = vld [vmem:[%s2723_s2 + $0x8] sm:$0xff] }
0x13ba   :  { %1313 = vrot.lane.b32.xlu0 %v2224_v31, %s2305_s0 }
0x142b   :  { %v1339_v33 = vpop.permute.xlu1 %1338 }
0x142c   :  { %v1341_v34 = vmul.f32 %v2218_v17, %v1339_v33  ;;  %v1314_v36 = vpop.permute.xlu0 %1313 }
0x142d   :  { %v1316_v62 = vmul.f32 %v2220_v18, %v1314_v36 }
0x142e   :  { %1343 = vrot.lane.b32.xlu0 %v1341_v34, %s2307_s25 }
0x142f   :  { %1347 = vrot.lane.b32.xlu1 %v1316_v62, %s2304_s17 }
0x14a0   :  { %v1344_v37 = vpop.permute.xlu0 %1343 }
0x14a1   :  { %v1348_v38 = vpop.permute.xlu1 %1347 }
0x14a2   :  { %v1350_v40 = vsel %vm214_vm3, %v1344_v37, %v1348_v38 }
0x14a3   :  { %1807 = vmatmul.mubr.msk.f32.vlgmr.msra.gmra.mrb[14].mxu1 %vm681_vm4, %v1350_v40 }
0x14a4   :  { %2071 = vmatpush3.bf16.msra.mxu1 %v2450_v47  ;;  %1919 = vmatprep.mubr.msk.f32.mxu1 %vm2309_vm5, %v2306_v53 }
0x14a5   :  { %2072 = vmatprep.subr.bf16.mxu1 %v2308_v32 }
0x14a8   :  { %2074 = vmatpush3.bf16.msra.mxu1 %v2453_v51 }
0x14a9   :  { %2075 = vmatprep.subr.bf16.mxu1 %v2308_v32 }
0x1576   :  { %v1420_v42 = vpop.f32.mrb[14].mxu1 }
0x1577   :  { %v1450_v45 = vadd.f32 %v1420_v42, %v507_v41  ;;  %v1422_v35 = vpop.f32.mrb[15].mxu1 }
0x1578   :  { %v1425_v46 = vadd.f32 %v1422_v35, %v2525_v7 }
0x1579   :  { %2225 = vtanh.f32 %v1450_v45  ;;  %v1809_v47 = vmul.f32 -1.442695, %v1450_v45 }
0x157a   :  { %2227 = vtanh.f32 %v1425_v46  ;;  %v1808_v51 = vmul.f32 -1.442695, %v1425_v46 }
0x157b   :  { %2229 = vpow2.f32 %v1809_v47 }
0x157c   :  { %2231 = vpow2.f32 %v1808_v51 }
0x1583   :  { %v2226_v50 = vpop.eup %2225 }
0x1584   :  { %v2228_v48 = vpop.eup %2227  ;;  %1460 = vrot.lane.b32.xlu1 %v2226_v50, %s2305_s0 }
0x1585   :  { %1435 = vrot.lane.b32.xlu0 %v2228_v48, %s2305_s0  ;;  %v2230_v52 = vpop.eup %2229 }
0x1586   :  { %v2232_v63 = vpop.eup %2231  ;;  %v1454_v19 = vadd.f32 1.0, %v2230_v52 }
0x1587   :  { %v1429_v0 = vadd.f32 1.0, %v2232_v63 }
0x1588   :  { %2233 = vrcp.f32 %v1454_v19 }
0x1589   :  { %2235 = vrcp.f32 %v1429_v0 }
0x1592   :  { %v2234_v56 = vpop.eup %2233 }
0x1593   :  { %v2236_v59 = vpop.eup %2235  ;;  %v1458_v5 = vmul.f32 %v2234_v56, %v1335_v26 }
0x1594   :  { %v1433_v8 = vmul.f32 %v2236_v59, %v1310_v29  ;;  %v2249_v29 = vld [vmem:[%s2723_s2 + $0x18] sm:$0xff] }
0x1595   :  { %v2111_v31 = vpack.i.bf16 %v2249_v29, %v2250_v30 }
0x15f6   :  { %v1461_v57 = vpop.permute.xlu1 %1460 }
0x15f7   :  { %v1463_v2 = vmul.f32 %v2234_v56, %v1461_v57  ;;  %v1436_v3 = vpop.permute.xlu0 %1435 }
0x15f8   :  { %v1438_v4 = vmul.f32 %v2236_v59, %v1436_v3 }
0x15f9   :  { %1465 = vrot.lane.b32.xlu1 %v1463_v2, %s2305_s0 }
0x15fa   :  { %1440 = vrot.lane.b32.xlu0 %v1438_v4, %s2305_s0 }
0x166b   :  { %v1466_v6 = vpop.permute.xlu1 %1465 }
0x166c   :  { %v1468_v9 = vadd.f32 %v1466_v6, %v1458_v5  ;;  %v1441_v60 = vpop.permute.xlu0 %1440 }
0x166d   :  { %v1443_v10 = vadd.f32 %v1441_v60, %v1433_v8 }
0x166e   :  { %2237 = vtanh.f32 %v1468_v9 }
0x166f   :  { %2239 = vtanh.f32 %v1443_v10 }
0x1678   :  { %v2238_v13 = vpop.eup %2237 }
0x1679   :  { %v2240_v54 = vpop.eup %2239  ;;  %1471 = vrot.lane.b32.xlu1 %v2238_v13, %s2305_s0 }
0x167a   :  { %1446 = vrot.lane.b32.xlu0 %v2240_v54, %s2305_s0 }
0x16eb   :  { %v1472_v15 = vpop.permute.xlu1 %1471 }
0x16ec   :  { %v1474_v55 = vmul.f32 %v2234_v56, %v1472_v15  ;;  %v1447_v58 = vpop.permute.xlu0 %1446 }
0x16ed   :  { %v1449_v39 = vmul.f32 %v2236_v59, %v1447_v58 }
0x16ee   :  { %1476 = vrot.lane.b32.xlu0 %v1474_v55, %s2307_s25 }
0x16ef   :  { %1480 = vrot.lane.b32.xlu1 %v1449_v39, %s2304_s17 }
0x1760   :  { %v1477_v43 = vpop.permute.xlu0 %1476 }
0x1761   :  { %v1481_v44 = vpop.permute.xlu1 %1480 }
0x1762   :  { %v1483_v49 = vsel %vm214_vm3, %v1477_v43, %v1481_v44 }
0x1763   :  { %1810 = vmatmul.mubr.msk.f32.vlgmr.msra.gmra.mrb[22].mxu0 %vm681_vm4, %v1483_v49 }
0x1836   :  { %v1553_v1 = vpop.f32.mrb[22].mxu0 }
0x1837   :  { %v1554_v16 = vpop.f32.mrb[23].mxu0 }
0x1838   :  { %v1557_v17 = vadd.f32 %v1554_v16, %v2525_v7 }
0x183a   :  { %2241 = vtanh.f32 %v1557_v17  ;;  %v1811_v18 = vmul.f32 -1.442695, %v1557_v17 }
0x183c   :  { %2243 = vpow2.f32 %v1811_v18 }
0x1844   :  { %v2242_v61 = vpop.eup %2241 }
0x1845   :  { %1567 = vrot.lane.b32.xlu0 %v2242_v61, %s2305_s0 }
0x1846   :  { %v2244_v20 = vpop.eup %2243 }
0x1847   :  { %v1561_v27 = vadd.f32 1.0, %v2244_v20 }
0x1849   :  { %2245 = vrcp.f32 %v1561_v27 }
0x1853   :  { %v2246_v21 = vpop.eup %2245 }
0x1854   :  { %v1565_v24 = vmul.f32 %v2246_v21, %v1443_v10 }
0x18b7   :  { %v1568_v22 = vpop.permute.xlu0 %1567 }
0x18b8   :  { %v1570_v23 = vmul.f32 %v2246_v21, %v1568_v22 }
0x18ba   :  { %1572 = vrot.lane.b32.xlu1 %v1570_v23, %s2305_s0 }
0x192c   :  { %v1573_v26 = vpop.permute.xlu1 %1572 }
0x192d   :  { %v1575_v28 = vadd.f32 %v1573_v26, %v1565_v24 }
0x192f   :  { %2247 = vtanh.f32 %v1575_v28 }
0x1939   :  { %v2248_v7 = vpop.eup %2247 }
0x193a   :  { %1578 = vrot.lane.b32.xlu0 %v2248_v7, %s2305_s0 }
0x193e   :  { %2112 = vrot.lane.b32.xlu0 %v2111_v31, %s2307_s25 }
0x19ac   :  { %v1579_v33 = vpop.permute.xlu0 %1578 }
0x19ad   :  { %v1581_v34 = vmul.f32 %v2246_v21, %v1579_v33 }
0x19af   :  { %1587 = vrot.lane.b32.xlu1 %v1581_v34, %s2307_s25 }
0x19b0   :  { %v2113_v36 = vpop.permute.xlu0 %2112 }
0x19b1   :  { %v2115_v62 = vunpack.i.h.bf16 %v2113_v36  ;;  %v2114_v37 = vunpack.i.l.bf16 %v2113_v36 }
0x19b3   :  { %2117 = vrot.lane.b32.xlu1 %v2116_v14, %s2307_s25  ;;  %v2076_v38 = vpack.c.bf16 %v2115_v62, %v2114_v37  ;;  %v1585_v14 = vrot.slane %v2251_v12, %v1584_v11 }
0x1a21   :  { %v1588_v40 = vpop.permute.xlu1 %1587 }
0x1a22   :  { %1920 = vmatmul.mubr.msk.f32.vlgmr.msra.gmra.mrb[16].mxu1 %vm214_vm3, %v1588_v40 }
0x1a23   :  { %2077 = vmatpush3.bf16.msra.mxu1 %v2076_v38  ;;  %1930 = vmatprep.mubr.msk.f32.mxu1 %vm2309_vm5, %v2306_v53  ;;  %v1668_v53 = vsub.s32 5, %v2439_v25 }
0x1a24   :  { %2078 = vmatprep.subr.bf16.mxu1 %v2308_v32 }
0x1a25   :  { %v2118_v41 = vpop.permute.xlu1 %2117  ;;  %v1669_v32 = vrot.slane %v2251_v12, %v1668_v53 }
0x1a26   :  { %v2120_v42 = vunpack.i.h.bf16 %v2118_v41  ;;  %v2119_v45 = vunpack.i.l.bf16 %v2118_v41 }
0x1a28   :  { %v2079_v35 = vpack.c.bf16 %v2120_v42, %v2119_v45 }
0x1a2a   :  { %2080 = vmatpush3.bf16.msra.mxu1 %v2079_v35 }
0x1af5   :  { %v1661_v46 = vpop.f32.mrb[16].mxu1 }
0x1af6   :  { %v1662_v50 = vadd.f32 %v1661_v46, %v1585_v14  ;;  %v1921_v48 = vpop.f32.mrb[17].mxu1 }
0x1af8   :  { %v1665_v47 = vmax.f32 %v1662_v50, 0.0 }
0x1afa   :  { %1931 = vmatmul.mubr.msk.f32.vlgmr.msra.gmra.mrb[18].mxu1 %vm214_vm3, %v1665_v47 }
0x1bcd   :  { %v1751_v51 = vpop.f32.mrb[18].mxu1 }
0x1bce   :  { %v1752_v52 = vadd.f32 %v1751_v51, %v1669_v32  ;;  %v1932_v63 = vpop.f32.mrb[19].mxu1 }
0x1bd0   :  { %1756 = vst.msk [vmem:[%s2726_s5] sm:$0xff] %vm1755_vm6, %v1752_v52 }
0x1bd1   :  { %1761 = vsyncpa [#allocation3], 1 }
0x1bd2   :  { %1762 = vsyncpa [#allocation5], 1 }

</bundles_post_ra>
